<compile_context>
chip_gen: v6e
topology: v6e:2x2x1
jax: 0.10.0
libtpu: 0.0.40
codegen_flags: <defaults>
</compile_context>

<pallas_src>
import jax
import jax.numpy as jnp
from jax import lax
from jax.experimental import pallas as pl
from jax.experimental.pallas import tpu as pltpu


# ----------------------------------------------------------------------------
# Pallas kernel: fused 1x1 conv (+bias+ReLU)  ->  3x3 conv pad=1 (+bias+ReLU)
# ----------------------------------------------------------------------------
def bottleneck_kernel(x_ref, xh_ref, w1_ref, b1_ref, w2_ref, b2_ref,
                      o_ref, hrows_ref):
    # x_ref:     (1, TH, W, Cin)    input row tile                    (bf16)
    # xh_ref:    (1, 2, W, Cin)     halo rows (above / below tile)    (bf16)
    # w1_ref:    (Cin, Chid)        1x1 conv weight, BN1 scale folded (bf16)
    # b1_ref:    (1, Chid)          folded BN1 bias                   (f32)
    # w2_ref:    (3, 3*Chid, Cout)  3x3 conv weight (kw folded in),   (bf16)
    #                               BN2 scale folded
    # b2_ref:    (1, Cout)          folded BN2 bias                   (f32)
    # o_ref:     (1, TH, W, Cout)   output row tile                   (f32)
    # hrows_ref: (TH+2, W, Chid)    hidden rows incl. halo (scratch)  (bf16)
    i = pl.program_id(1)
    n_row_tiles = pl.num_programs(1)

    _, TH, W, Cin = x_ref.shape
    Chid = w1_ref.shape[1]
    Cout = w2_ref.shape[2]

    w1 = w1_ref[...]
    b1 = b1_ref[...]

    def conv1_bias_relu(x2d):  # (rows, Cin) bf16 -> (rows, Chid) f32
        h = jnp.dot(x2d, w1, preferred_element_type=jnp.float32)
        return jnp.maximum(h + b1, 0.0)

    # ---- conv1 + bias + ReLU on the body rows, stored straight into scratch ----
    hb = conv1_bias_relu(x_ref[...].reshape(TH * W, Cin))
    hrows_ref[1:TH + 1, :, :] = hb.reshape(TH, W, Chid).astype(hrows_ref.dtype)

    # ---- conv1 on the two halo rows (recomputed; zeroed at image edges) ----
    hh = conv1_bias_relu(xh_ref[...].reshape(2 * W, Cin)).reshape(2, W, Chid)
    top_valid = jnp.where(i > 0, 1.0, 0.0)
    bot_valid = jnp.where(i < n_row_tiles - 1, 1.0, 0.0)
    hrows_ref[0:1, :, :] = (hh[0:1] * top_valid).astype(hrows_ref.dtype)
    hrows_ref[TH + 1:TH + 2, :, :] = (hh[1:2] * bot_valid).astype(hrows_ref.dtype)

    # ---- conv2: im2col along kw (lane-aligned concat), 3 MXU matmuls (per kh) ----
    hs = hrows_ref[...]                                       # (TH+2, W, Chid)
    zc = jnp.zeros((TH + 2, 1, Chid), hs.dtype)
    left = jnp.concatenate([zc, hs[:, :W - 1, :]], axis=1)    # hidden[.., w-1, :]
    right = jnp.concatenate([hs[:, 1:, :], zc], axis=1)       # hidden[.., w+1, :]
    hcat = jnp.concatenate([left, hs, right], axis=-1)        # (TH+2, W, 3*Chid)

    acc = jnp.dot(hcat[0:TH].reshape(TH * W, 3 * Chid), w2_ref[0],
                  preferred_element_type=jnp.float32)
    for kh in range(1, 3):
        acc += jnp.dot(hcat[kh:kh + TH].reshape(TH * W, 3 * Chid), w2_ref[kh],
                       preferred_element_type=jnp.float32)

    # ---- bias + ReLU (f32 epilogue) and lane-dense store ----
    y = jnp.maximum(acc + b2_ref[...], 0.0)
    o_ref[...] = y.reshape(1, TH, W, Cout).astype(o_ref.dtype)


# ----------------------------------------------------------------------------
# Wrapper
# ----------------------------------------------------------------------------
def _round_up(v, m):
    return ((v + m - 1) // m) * m


def _pick_tile_h(H, W, cin, chid, cout, budget_bytes=16 * 1024 * 1024):
    """Largest row-tile height dividing H whose per-step VMEM footprint fits."""
    def footprint(th):
        bf, f4 = 2, 4
        return (2 * th * W * cin * bf            # double-buffered x block
                + 2 * 2 * W * cin * bf           # halo block
                + (th + 2) * W * chid * bf       # hidden scratch
                + (th + 2) * W * 3 * chid * bf   # im2col window
                + th * W * cout * f4             # f32 accumulator
                + 2 * th * W * cout * f4         # double-buffered output block
                + cin * chid * bf + 9 * chid * cout * bf)   # resident weights
    best = 1
    for th in range(1, H + 1):
        if H % th == 0 and footprint(th) <= budget_bytes:
            best = th
    return best


def bottleneck_forward(x_nchw, w1_oihw, s1, b1, w2_oihw, s2, b2, *, tile_h=None):
    """x_nchw: (N, Cin, H, W) f32.  Returns (N, Cout, H, W) f32."""
    N, Cin, H, W = x_nchw.shape
    Chid = w1_oihw.shape[0]
    Cout = w2_oihw.shape[0]

    LANE = 128
    Cinp, Chidp, Coutp = (_round_up(c, LANE) for c in (Cin, Chid, Cout))

    if tile_h is None:
        tile_h = _pick_tile_h(H, W, Cinp, Chidp, Coutp)
    assert H % tile_h == 0, f"tile_h={tile_h} must divide H={H}"
    n_row_tiles = H // tile_h

    # TODO(synk): keep the surrounding model in NHWC with 128-padded channels so
    # these layout / pad ops amortize across layers instead of running per call.
    x = jnp.transpose(x_nchw, (0, 2, 3, 1))                        # NCHW -> NHWC
    x = jnp.pad(x, ((0, 0), (0, 0), (0, 0), (0, Cinp - Cin)))
    x = x.astype(jnp.bfloat16)

    # Halo rows: tile i needs x rows i*TH-1 and i*TH+TH.  Off-image slots are
    # masked inside the kernel, so the roll wrap-around content is irrelevant.
    xt = x.reshape(N, n_row_tiles, tile_h, W, Cinp)
    top = jnp.roll(xt[:, :, tile_h - 1], shift=1, axis=1)          # row above tile
    bot = jnp.roll(xt[:, :, 0], shift=-1, axis=1)                  # row below tile
    x_halo = jnp.stack([top, bot], axis=2).reshape(N, 2 * n_row_tiles, W, Cinp)

    # Weights with BN scale folded in (f32 fold, then bf16), channel-padded,
    # matmul-ready; BN biases stay f32.
    w1f = w1_oihw[:, :, 0, 0] * s1[:, None]                        # (Chid, Cin)
    w1 = jnp.transpose(w1f, (1, 0))                                # (Cin, Chid)
    w1 = jnp.pad(w1, ((0, Cinp - Cin), (0, Chidp - Chid))).astype(jnp.bfloat16)
    w2f = w2_oihw * s2[:, None, None, None]                        # OIHW, scaled
    w2 = jnp.transpose(w2f, (2, 3, 1, 0))                          # HWIO (3,3,Chid,Cout)
    w2 = jnp.pad(w2, ((0, 0), (0, 0), (0, Chidp - Chid), (0, Coutp - Cout)))
    w2 = w2.reshape(3, 3 * Chidp, Coutp).astype(jnp.bfloat16)      # fold kw into rows
    b1p = jnp.pad(b1, (0, Chidp - Chid)).reshape(1, Chidp).astype(jnp.float32)
    b2p = jnp.pad(b2, (0, Coutp - Cout)).reshape(1, Coutp).astype(jnp.float32)

    flops = 2 * N * H * W * (Cinp * Chidp + 9 * Chidp * Coutp)
    bytes_accessed = (int(x.size) + int(x_halo.size) + int(w1.size)
                      + int(w2.size)) * 2 + N * H * W * Coutp * 4

    out = pl.pallas_call(
        bottleneck_kernel,
        out_shape=jax.ShapeDtypeStruct((N, H, W, Coutp), jnp.float32),
        grid_spec=pltpu.PrefetchScalarGridSpec(
            num_scalar_prefetch=0,
            grid=(N, n_row_tiles),
            in_specs=[
                pl.BlockSpec((1, tile_h, W, Cinp), lambda n, i: (n, i, 0, 0)),
                pl.BlockSpec((1, 2, W, Cinp), lambda n, i: (n, i, 0, 0)),
                pl.BlockSpec((Cinp, Chidp), lambda n, i: (0, 0)),
                pl.BlockSpec((1, Chidp), lambda n, i: (0, 0)),
                pl.BlockSpec((3, 3 * Chidp, Coutp), lambda n, i: (0, 0, 0)),
                pl.BlockSpec((1, Coutp), lambda n, i: (0, 0)),
            ],
            out_specs=pl.BlockSpec((1, tile_h, W, Coutp),
                                   lambda n, i: (n, i, 0, 0)),
            scratch_shapes=[pltpu.VMEM((tile_h + 2, W, Chidp), jnp.bfloat16)],
        ),
        compiler_params=pltpu.CompilerParams(
            dimension_semantics=("parallel", "parallel"),
            vmem_limit_bytes=32 * 1024 * 1024),
        cost_estimate=pl.CostEstimate(flops=int(flops), transcendentals=0,
                                      bytes_accessed=int(bytes_accessed)),
    )(x, x_halo, w1, b1p, w2, b2p)

    out = out[..., :Cout]                                          # drop channel pad
    return jnp.transpose(out, (0, 3, 1, 2))                        # NHWC -> NCHW


# ----------------------------------------------------------------------------
# Pure-JAX reference matching the kernel's numerics (BN scale folded into the
# weights before the bf16 cast, bf16 MXU inputs, f32 accumulation, f32
# bias/ReLU epilogues) for the correctness check.
# ----------------------------------------------------------------------------
def reference_forward(x, w1_oihw, s1, b1, w2_oihw, s2, b2):
    q = lambda t: t.astype(jnp.bfloat16).astype(jnp.float32)
    w1f = w1_oihw * s1[:, None, None, None]
    w2f = w2_oihw * s2[:, None, None, None]
    dn = ('NCHW', 'OIHW', 'NCHW')
    y = lax.conv_general_dilated(q(x), q(w1f), (1, 1), 'SAME',
                                 dimension_numbers=dn)
    y = jnp.maximum(y + b1[None, :, None, None], 0.0)
    y = lax.conv_general_dilated(q(y), q(w2f), (1, 1), 'SAME',
                                 dimension_numbers=dn)
    y = jnp.maximum(y + b2[None, :, None, None], 0.0)
    return y


def fold_bn(gamma, beta, mean, var, eps=1e-3):
    scale = gamma / jnp.sqrt(var + eps)
    bias = beta - mean * scale
    return scale, bias


if __name__ == "__main__":
    # Bottleneck(in_channels=4, out_channels=4, expansion=0.5, act='ReLU')
    in_channels, out_channels, expansion = 4, 4, 0.5
    hidden_channels = int(out_channels * expansion)          # 2
    N, H, W = 2, 16, 16

    key = jax.random.PRNGKey(0)
    kx, kw1, kw2, kg1, kb1, kg2, kb2 = jax.random.split(key, 7)

    x = jax.random.normal(kx, (N, in_channels, H, W), jnp.float32)

    # conv weights (PyTorch OIHW layout), bias=False in BaseConv
    w1 = jax.random.normal(kw1, (hidden_channels, in_channels, 1, 1),
                           jnp.float32) * 0.5
    w2 = jax.random.normal(kw2, (out_channels, hidden_channels, 3, 3),
                           jnp.float32) * 0.2

    # deterministic BatchNorm parameters (eval mode, folded into scale/bias)
    g1 = 1.0 + 0.1 * jax.random.normal(kg1, (hidden_channels,), jnp.float32)
    be1 = 0.1 * jax.random.normal(kb1, (hidden_channels,), jnp.float32)
    m1 = jnp.linspace(-0.2, 0.2, hidden_channels, dtype=jnp.float32)
    v1 = jnp.linspace(0.8, 1.2, hidden_channels, dtype=jnp.float32)

    g2 = 1.0 + 0.1 * jax.random.normal(kg2, (out_channels,), jnp.float32)
    be2 = 0.1 * jax.random.normal(kb2, (out_channels,), jnp.float32)
    m2 = jnp.linspace(-0.3, 0.3, out_channels, dtype=jnp.float32)
    v2 = jnp.linspace(0.7, 1.3, out_channels, dtype=jnp.float32)

    s1, b1 = fold_bn(g1, be1, m1, v1)
    s2, b2 = fold_bn(g2, be2, m2, v2)

    # tile_h=8 -> 2 row tiles per image: exercises the halo + grid path.
    y = bottleneck_forward(x, w1, s1, b1, w2, s2, b2, tile_h=8)
    y = jax.block_until_ready(y)

    y_ref = reference_forward(x, w1, s1, b1, w2, s2, b2)
    assert y.shape == (N, out_channels, H, W)
    assert jnp.allclose(y, y_ref, atol=2e-2, rtol=2e-2), \
        f"max abs err = {jnp.max(jnp.abs(y - y_ref))}"

    print("KERNEL_OK")
</pallas_src>

<mosaic_0001>
module attributes {stable_mosaic.version = 11 : i64} {
  func.func @bottleneck_kernel(%arg0: i32, %arg1: i32, %arg2: memref<1x8x16x128xbf16, #tpu.memory_space<vmem>>, %arg3: memref<1x2x16x128xbf16, #tpu.memory_space<vmem>>, %arg4: memref<128x128xbf16, #tpu.memory_space<vmem>>, %arg5: memref<1x128xf32, #tpu.memory_space<vmem>>, %arg6: memref<3x384x128xbf16, #tpu.memory_space<vmem>>, %arg7: memref<1x128xf32, #tpu.memory_space<vmem>>, %arg8: memref<1x8x16x128xf32, #tpu.memory_space<vmem>>, %arg9: memref<10x16x128xbf16, #tpu.memory_space<vmem>>) attributes {dimension_semantics = [#tpu.dimension_semantics<parallel>, #tpu.dimension_semantics<parallel>], iteration_bounds = array<i64: 2, 2>, scalar_prefetch = 0 : i64, scratch_operands = 1 : i64, tpu.core_type = #tpu.core_type<tc>, window_params = [{transform_indices = @transform_0, window_bounds = array<i64: 1, 8, 16, 128>}, {transform_indices = @transform_1, window_bounds = array<i64: 1, 2, 16, 128>}, {pipeline_mode = #tpu.pipeline_mode<synchronous>, transform_indices = @transform_2, window_bounds = array<i64: 128, 128>}, {pipeline_mode = #tpu.pipeline_mode<synchronous>, transform_indices = @transform_3, window_bounds = array<i64: 1, 128>}, {pipeline_mode = #tpu.pipeline_mode<synchronous>, transform_indices = @transform_4, window_bounds = array<i64: 3, 384, 128>}, {pipeline_mode = #tpu.pipeline_mode<synchronous>, transform_indices = @transform_5, window_bounds = array<i64: 1, 128>}, {transform_indices = @transform_6, window_bounds = array<i64: 1, 8, 16, 128>}]} {
    %c0 = arith.constant 0 : index
    %c0_0 = arith.constant 0 : index
    %0 = vector.load %arg4[%c0, %c0_0] : memref<128x128xbf16, #tpu.memory_space<vmem>>, vector<128x128xbf16>
    %c0_1 = arith.constant 0 : index
    %c0_2 = arith.constant 0 : index
    %1 = vector.load %arg5[%c0_1, %c0_2] : memref<1x128xf32, #tpu.memory_space<vmem>>, vector<1x128xf32>
    %c0_3 = arith.constant 0 : index
    %c0_4 = arith.constant 0 : index
    %c0_5 = arith.constant 0 : index
    %c0_6 = arith.constant 0 : index
    %2 = vector.load %arg2[%c0_3, %c0_4, %c0_5, %c0_6] : memref<1x8x16x128xbf16, #tpu.memory_space<vmem>>, vector<1x8x16x128xbf16>
    %3 = vector.shape_cast %2 : vector<1x8x16x128xbf16> to vector<128x128xbf16>
    %cst = arith.constant dense<0.000000e+00> : vector<128x128xf32>
    %4 = tpu.matmul %3, %0, %cst {dimension_numbers = #tpu.dot_dimension_numbers<[1], [0], [0], [1], [0, 0, 1, 1], [], []>} : vector<128x128xbf16>, vector<128x128xbf16>, vector<128x128xf32> -> vector<128x128xf32>
    %5 = vector.broadcast %1 : vector<1x128xf32> to vector<128x128xf32>
    %6 = arith.addf %4, %5 : vector<128x128xf32>
    %cst_7 = arith.constant 0.000000e+00 : f32
    %7 = vector.broadcast %cst_7 : f32 to vector<128x128xf32>
    %8 = arith.maximumf %6, %7 : vector<128x128xf32>
    %9 = vector.shape_cast %8 : vector<128x128xf32> to vector<8x16x128xf32>
    %10 = arith.truncf %9 : vector<8x16x128xf32> to vector<8x16x128xbf16>
    %c1 = arith.constant 1 : index
    %c0_8 = arith.constant 0 : index
    %c0_9 = arith.constant 0 : index
    %11 = vector.load %arg9[%c1, %c0_8, %c0_9] : memref<10x16x128xbf16, #tpu.memory_space<vmem>>, vector<8x16x128xbf16>
    tpu.vector_store %arg9[%c1, %c0_8, %c0_9], %10 {strides = array<i32>} : memref<10x16x128xbf16, #tpu.memory_space<vmem>>, vector<8x16x128xbf16>,
    %c0_10 = arith.constant 0 : index
    %c0_11 = arith.constant 0 : index
    %c0_12 = arith.constant 0 : index
    %c0_13 = arith.constant 0 : index
    %12 = vector.load %arg3[%c0_10, %c0_11, %c0_12, %c0_13] : memref<1x2x16x128xbf16, #tpu.memory_space<vmem>>, vector<1x2x16x128xbf16>
    %13 = vector.shape_cast %12 : vector<1x2x16x128xbf16> to vector<32x128xbf16>
    %cst_14 = arith.constant dense<0.000000e+00> : vector<32x128xf32>
    %14 = tpu.matmul %13, %0, %cst_14 {dimension_numbers = #tpu.dot_dimension_numbers<[1], [0], [0], [1], [0, 0, 1, 1], [], []>} : vector<32x128xbf16>, vector<128x128xbf16>, vector<32x128xf32> -> vector<32x128xf32>
    %15 = vector.broadcast %1 : vector<1x128xf32> to vector<32x128xf32>
    %16 = arith.addf %14, %15 : vector<32x128xf32>
    %cst_15 = arith.constant 0.000000e+00 : f32
    %17 = vector.broadcast %cst_15 : f32 to vector<32x128xf32>
    %18 = arith.maximumf %16, %17 : vector<32x128xf32>
    %19 = vector.shape_cast %18 : vector<32x128xf32> to vector<2x16x128xf32>
    %c0_i32 = arith.constant 0 : i32
    %20 = arith.cmpi sgt, %arg1, %c0_i32 : i32
    %cst_16 = arith.constant 1.000000e+00 : f32
    %cst_17 = arith.constant 0.000000e+00 : f32
    %21 = arith.select %20, %cst_16, %cst_17 : f32
    %c1_i32 = arith.constant 1 : i32
    %22 = arith.cmpi slt, %arg1, %c1_i32 : i32
    %cst_18 = arith.constant 1.000000e+00 : f32
    %cst_19 = arith.constant 0.000000e+00 : f32
    %23 = arith.select %22, %cst_18, %cst_19 : f32
    %24 = vector.extract_strided_slice %19 {offsets = [0, 0, 0], sizes = [1, 16, 128], strides = [1, 1, 1]} : vector<2x16x128xf32> to vector<1x16x128xf32>
    %25 = vector.broadcast %21 : f32 to vector<1x16x128xf32>
    %26 = arith.mulf %24, %25 : vector<1x16x128xf32>
    %27 = arith.truncf %26 : vector<1x16x128xf32> to vector<1x16x128xbf16>
    %c0_20 = arith.constant 0 : index
    %c0_21 = arith.constant 0 : index
    %c0_22 = arith.constant 0 : index
    %28 = vector.load %arg9[%c0_20, %c0_21, %c0_22] : memref<10x16x128xbf16, #tpu.memory_space<vmem>>, vector<1x16x128xbf16>
    tpu.vector_store %arg9[%c0_20, %c0_21, %c0_22], %27 {strides = array<i32>} : memref<10x16x128xbf16, #tpu.memory_space<vmem>>, vector<1x16x128xbf16>,
    %29 = vector.extract_strided_slice %19 {offsets = [1, 0, 0], sizes = [1, 16, 128], strides = [1, 1, 1]} : vector<2x16x128xf32> to vector<1x16x128xf32>
    %30 = vector.broadcast %23 : f32 to vector<1x16x128xf32>
    %31 = arith.mulf %29, %30 : vector<1x16x128xf32>
    %32 = arith.truncf %31 : vector<1x16x128xf32> to vector<1x16x128xbf16>
    %c9 = arith.constant 9 : index
    %c0_23 = arith.constant 0 : index
    %c0_24 = arith.constant 0 : index
    %33 = vector.load %arg9[%c9, %c0_23, %c0_24] : memref<10x16x128xbf16, #tpu.memory_space<vmem>>, vector<1x16x128xbf16>
    tpu.vector_store %arg9[%c9, %c0_23, %c0_24], %32 {strides = array<i32>} : memref<10x16x128xbf16, #tpu.memory_space<vmem>>, vector<1x16x128xbf16>,
    %c0_25 = arith.constant 0 : index
    %c0_26 = arith.constant 0 : index
    %c0_27 = arith.constant 0 : index
    %34 = vector.load %arg9[%c0_25, %c0_26, %c0_27] : memref<10x16x128xbf16, #tpu.memory_space<vmem>>, vector<10x16x128xbf16>
    %cst_28 = arith.constant 0.000000e+00 : bf16
    %35 = vector.broadcast %cst_28 : bf16 to vector<10x1x128xbf16>
    %36 = vector.extract_strided_slice %34 {offsets = [0, 0, 0], sizes = [10, 15, 128], strides = [1, 1, 1]} : vector<10x16x128xbf16> to vector<10x15x128xbf16>
    %37 = tpu.concatenate %35, %36 in 1 : vector<10x1x128xbf16>, vector<10x15x128xbf16> -> vector<10x16x128xbf16>
    %38 = vector.extract_strided_slice %34 {offsets = [0, 1, 0], sizes = [10, 15, 128], strides = [1, 1, 1]} : vector<10x16x128xbf16> to vector<10x15x128xbf16>
    %39 = tpu.concatenate %38, %35 in 1 : vector<10x15x128xbf16>, vector<10x1x128xbf16> -> vector<10x16x128xbf16>
    %40 = tpu.concatenate %37, %34, %39 in 2 : vector<10x16x128xbf16>, vector<10x16x128xbf16>, vector<10x16x128xbf16> -> vector<10x16x384xbf16>
    %41 = vector.extract_strided_slice %40 {offsets = [0, 0, 0], sizes = [8, 16, 384], strides = [1, 1, 1]} : vector<10x16x384xbf16> to vector<8x16x384xbf16>
    %42 = vector.shape_cast %41 : vector<8x16x384xbf16> to vector<128x384xbf16>
    %c0_29 = arith.constant 0 : index
    %c0_30 = arith.constant 0 : index
    %c0_31 = arith.constant 0 : index
    %43 = vector.load %arg6[%c0_29, %c0_30, %c0_31] : memref<3x384x128xbf16, #tpu.memory_space<vmem>>, vector<1x384x128xbf16>
    %44 = vector.shape_cast %43 : vector<1x384x128xbf16> to vector<384x128xbf16>
    %cst_32 = arith.constant dense<0.000000e+00> : vector<128x128xf32>
    %45 = tpu.matmul %42, %44, %cst_32 {dimension_numbers = #tpu.dot_dimension_numbers<[1], [0], [0], [1], [0, 0, 1, 1], [], []>} : vector<128x384xbf16>, vector<384x128xbf16>, vector<128x128xf32> -> vector<128x128xf32>
    %46 = vector.extract_strided_slice %40 {offsets = [1, 0, 0], sizes = [8, 16, 384], strides = [1, 1, 1]} : vector<10x16x384xbf16> to vector<8x16x384xbf16>
    %47 = vector.shape_cast %46 : vector<8x16x384xbf16> to vector<128x384xbf16>
    %c1_33 = arith.constant 1 : index
    %c0_34 = arith.constant 0 : index
    %c0_35 = arith.constant 0 : index
    %48 = vector.load %arg6[%c1_33, %c0_34, %c0_35] : memref<3x384x128xbf16, #tpu.memory_space<vmem>>, vector<1x384x128xbf16>
    %49 = vector.shape_cast %48 : vector<1x384x128xbf16> to vector<384x128xbf16>
    %cst_36 = arith.constant dense<0.000000e+00> : vector<128x128xf32>
    %50 = tpu.matmul %47, %49, %cst_36 {dimension_numbers = #tpu.dot_dimension_numbers<[1], [0], [0], [1], [0, 0, 1, 1], [], []>} : vector<128x384xbf16>, vector<384x128xbf16>, vector<128x128xf32> -> vector<128x128xf32>
    %51 = arith.addf %45, %50 : vector<128x128xf32>
    %52 = vector.extract_strided_slice %40 {offsets = [2, 0, 0], sizes = [8, 16, 384], strides = [1, 1, 1]} : vector<10x16x384xbf16> to vector<8x16x384xbf16>
    %53 = vector.shape_cast %52 : vector<8x16x384xbf16> to vector<128x384xbf16>
    %c2 = arith.constant 2 : index
    %c0_37 = arith.constant 0 : index
    %c0_38 = arith.constant 0 : index
    %54 = vector.load %arg6[%c2, %c0_37, %c0_38] : memref<3x384x128xbf16, #tpu.memory_space<vmem>>, vector<1x384x128xbf16>
    %55 = vector.shape_cast %54 : vector<1x384x128xbf16> to vector<384x128xbf16>
    %cst_39 = arith.constant dense<0.000000e+00> : vector<128x128xf32>
    %56 = tpu.matmul %53, %55, %cst_39 {dimension_numbers = #tpu.dot_dimension_numbers<[1], [0], [0], [1], [0, 0, 1, 1], [], []>} : vector<128x384xbf16>, vector<384x128xbf16>, vector<128x128xf32> -> vector<128x128xf32>
    %57 = arith.addf %51, %56 : vector<128x128xf32>
    %c0_40 = arith.constant 0 : index
    %c0_41 = arith.constant 0 : index
    %58 = vector.load %arg7[%c0_40, %c0_41] : memref<1x128xf32, #tpu.memory_space<vmem>>, vector<1x128xf32>
    %59 = vector.broadcast %58 : vector<1x128xf32> to vector<128x128xf32>
    %60 = arith.addf %57, %59 : vector<128x128xf32>
    %cst_42 = arith.constant 0.000000e+00 : f32
    %61 = vector.broadcast %cst_42 : f32 to vector<128x128xf32>
    %62 = arith.maximumf %60, %61 : vector<128x128xf32>
    %63 = vector.shape_cast %62 : vector<128x128xf32> to vector<1x8x16x128xf32>
    %c0_43 = arith.constant 0 : index
    %c0_44 = arith.constant 0 : index
    %c0_45 = arith.constant 0 : index
    %c0_46 = arith.constant 0 : index
    %64 = vector.load %arg8[%c0_43, %c0_44, %c0_45, %c0_46] : memref<1x8x16x128xf32, #tpu.memory_space<vmem>>, vector<1x8x16x128xf32>
    tpu.vector_store %arg8[%c0_43, %c0_44, %c0_45, %c0_46], %63 {strides = array<i32>} : memref<1x8x16x128xf32, #tpu.memory_space<vmem>>, vector<1x8x16x128xf32>,
    return
  }
  func.func @transform_0(%arg0: i32, %arg1: i32) -> (i32, i32, i32, i32) {
    %c0_i32 = arith.constant 0 : i32
    %c0_i32_0 = arith.constant 0 : i32
    %c0_i32_1 = arith.constant 0 : i32
    return %arg0, %arg1, %c0_i32, %c0_i32_0 : i32, i32, i32, i32
  }
  func.func @transform_1(%arg0: i32, %arg1: i32) -> (i32, i32, i32, i32) {
    %c0_i32 = arith.constant 0 : i32
    %c0_i32_0 = arith.constant 0 : i32
    %c0_i32_1 = arith.constant 0 : i32
    return %arg0, %arg1, %c0_i32, %c0_i32_0 : i32, i32, i32, i32
  }
  func.func @transform_2(%arg0: i32, %arg1: i32) -> (i32, i32) {
    %c0_i32 = arith.constant 0 : i32
    %c0_i32_0 = arith.constant 0 : i32
    %c0_i32_1 = arith.constant 0 : i32
    return %c0_i32, %c0_i32_0 : i32, i32
  }
  func.func @transform_3(%arg0: i32, %arg1: i32) -> (i32, i32) {
    %c0_i32 = arith.constant 0 : i32
    %c0_i32_0 = arith.constant 0 : i32
    %c0_i32_1 = arith.constant 0 : i32
    return %c0_i32, %c0_i32_0 : i32, i32
  }
  func.func @transform_4(%arg0: i32, %arg1: i32) -> (i32, i32, i32) {
    %c0_i32 = arith.constant 0 : i32
    %c0_i32_0 = arith.constant 0 : i32
    %c0_i32_1 = arith.constant 0 : i32
    %c0_i32_2 = arith.constant 0 : i32
    return %c0_i32, %c0_i32_0, %c0_i32_1 : i32, i32, i32
  }
  func.func @transform_5(%arg0: i32, %arg1: i32) -> (i32, i32) {
    %c0_i32 = arith.constant 0 : i32
    %c0_i32_0 = arith.constant 0 : i32
    %c0_i32_1 = arith.constant 0 : i32
    return %c0_i32, %c0_i32_0 : i32, i32
  }
  func.func @transform_6(%arg0: i32, %arg1: i32) -> (i32, i32, i32, i32) {
    %c0_i32 = arith.constant 0 : i32
    %c0_i32_0 = arith.constant 0 : i32
    %c0_i32_1 = arith.constant 0 : i32
    return %arg0, %arg1, %c0_i32, %c0_i32_0 : i32, i32, i32, i32
  }
}

</mosaic_0001>

<bundles_post_ra>
// kernel: tpu_custom_call.1
= control target key start
LH: loop header
LB: loop body
LE: loop exit
PB: predicated region body
PF: predicated region fallthrough
CT: control target
= control target key end

     0   :  { %s4240_s0 = inlined_call_operand.hbm [shape: bf16[2,16,16,128], index: 0, kind: input, shape index: {}]   ;;  %s4241_s1 = inlined_call_operand.hbm [shape: bf16[2,4,16,128], index: 1, kind: input, shape index: {}]   ;;  %s4242_s2 = inlined_call_operand.hbm [shape: bf16[128,128], index: 2, kind: input, shape index: {}]   ;;  %s4243_s3 = inlined_call_operand.vmem [shape: f32[1,128], index: 3, kind: input, shape index: {}]   ;;  %s4244_s4 = inlined_call_operand.hbm [shape: bf16[3,384,128], index: 4, kind: input, shape index: {}]   ;;  %s4245_s5 = inlined_call_operand.vmem [shape: f32[1,128], index: 5, kind: input, shape index: {}]   ;;  %s4246_s6 = inlined_call_operand.hbm [shape: f32[2,16,16,128], index: 6, kind: output, shape index: {}]  }
   0x1   :  { %4258 = sst [smem:[#allocation37_spill]] %s4240_s0 }
   0x2   :  { %4259 = sst [smem:[#allocation38_spill]] %s4242_s2 }
   0x3   :  { %4260 = sst [smem:[#allocation39_spill]] %s4244_s4 }
   0x4   :  { %4261 = sst [smem:[#allocation40_spill]] %s4245_s5 }
   0x5   :  { %4262 = sst [smem:[#allocation41_spill]] %s4246_s6 }
   0x6   :  { %11 = vsyncpa [#allocation4], 0 }
   0x7   :  { %13 = vsyncpa [#allocation4 + $0x1], 0 }
   0x8   :  { %14 = vsyncpa [#allocation7], 0 }
   0x9   :  { %16 = vsyncpa [#allocation7 + $0x1], 0 }
   0xa   :  { %17 = vsyncpa [#allocation10], 0 }
   0xb   :  { %18 = vsyncpa [#allocation5], 0 }
   0xc   :  { %20 = vsyncpa [#allocation5 + $0x1], 0  ;;  %s3510_s21 = smov 0   ;;  %s3512_s22 = smov 0  }
   0xd   :  { %s3514_s23 = smov 0   ;;  %s3516_s24 = smov 0  }
   0xe   :  { %s3518_s25 = smov 0   ;;  %s3520_s26 = smov 0  }
   0xf   :  { %s3522_s27 = smov 0   ;;  %s3524_s28 = smov 0  }
  0x10 LB: > { %4263 = sst [smem:[#allocation17_spill]] %s3436_s21  ;;  %s3551_s29 = sadd.s32 4294967295, %s3464_s28   ;;  %s3464_s28 = sphi %s3524_s28, %s26_s28   ;;  %s3460_s27 = sphi %s3522_s27, %s4327_s27   ;;  %s3456_s26 = sphi %s3520_s26, %s4326_s26   ;;  %s3452_s25 = sphi %s3518_s25, %s4325_s25   ;;  %s3448_s24 = sphi %s3516_s24, %s4324_s24   ;;  %s3444_s23 = sphi %s3514_s23, %s4323_s23   ;;  %s3440_s22 = sphi %s3512_s22, %s4322_s22   ;;  %s3436_s21 = sphi %s3510_s21, %s4321_s21  }
  0x11   : > { %4264 = sst [smem:[#allocation18_spill]] %s3452_s25  ;;  %s2396_s30 = sadd.s32 4294967294, %s3464_s28  }
  0x12   : > { %p60_p0 = scmp.ne.s32.totalorder %s3440_s22, %s3436_s21  ;;  %p61_p1 = scmp.eq.s32.totalorder %s3551_s29, 0 }
  0x13   : > { %p198_p2 = scmp.eq.s32.totalorder %s3551_s29, 3  ;;  %p204_p3 = scmp.eq.s32.totalorder %s2396_s30, 3 }
  0x14   : > { %p3560_p4 = por %p61_p1, %p60_p0  ;;  %p2397_p5 = scmp.ge.s32.totalorder %s3464_s28, 1 }
  0x15   : > { %p3565_p6 = por %p204_p3, %p60_p0  ;;  %p211_p7 = scmp.lt.s32.totalorder %s3464_s28, 5 }
  0x16   : > { %s3466_s10 = smov [#allocation8]   ;;  %s3467_s13 = smov [#allocation9]  }
  0x17   : > { %s4266_s8 = scalar_select %p3565_p6, 1, 0 }
  0x18   : > { %p3570_p8 = pnand %p2397_p5, %p211_p7  ;;  %s223_s11 = sshll.u32 %s3466_s10, 4  ;;  %s224_s11 = int_to_ptr.vmem [resolvable:$true] %s223_s11 }
  0x19   : > { %4267 = sst [smem:[#allocation19_spill]] %s4266_s8  ;;  %s239_s14 = sshll.u32 %s3467_s13, 4  ;;  %s240_s14 = int_to_ptr.vmem [resolvable:$true] %s239_s14 }
  0x1a   : > { %p3054_p9 = pneg %p3570_p8  ;;  %s3259_s15 = scalar_lea.vmem %s224_s11, 1024 }
  0x1b   : > { %p3260_p12 = scmp.ne.s32.totalorder %s224_s11, %s3259_s15  ;;  %p3267_p3 = scmp.lt.s32.totalorder %s224_s11, %s224_s11 }
  0x1c   : > { %p3578_p10 = pnand %p3054_p9, %p61_p1  ;;  %p3268_p5 = scmp.lt.s32.totalorder %s3259_s15, %s3259_s15 }
  0x1e   : > { %p3250_p11 = pneg %p3578_p10  ;;  %p3269_p7 = por %p3268_p5, %p3267_p3 }
  0x20   : > { %p3262_p13 = pnand %p3260_p12, %p3250_p11 }
  0x22   : > { %p3263_p0 = pneg %p3262_p13 }
  0x24   : > { %p3270_p9 = pnand %p3269_p7, %p3263_p0 }
  0x26   : > { %3273 = shalt.err (!%p3270_p9)
}
  0x27   : > { %s4247_s16 = smov 64   ;;  %s4249_s17 = smov 4  }
  0x28   : > { %s4270_s2 = sld [smem:[#allocation38_spill]]  ;;  %s3285_s20 = scalar_lea.vmem %s240_s14, 9216 }
  0x29   : > { %p3286_p12 = scmp.ne.s32.totalorder %s240_s14, %s3285_s20  ;;  %p3293_p0 = scmp.lt.s32.totalorder %s240_s14, %s240_s14 }
  0x2a   : > { %p3294_p5 = scmp.lt.s32.totalorder %s3285_s20, %s3285_s20 }
  0x2b   : > { %p3288_p13 = pnand %p3286_p12, %p3250_p11 }
  0x2c   : > { %p3295_p7 = por %p3294_p5, %p3293_p0 }
  0x2d   : > { %p3289_p3 = pneg %p3288_p13 }
  0x2e   : > { %3057 = dma.hbm_to_vmem [thread:$0]  (!%p3578_p10), %s4270_s2, 1024, %s224_s11, [#allocation7], %s4247_s16, %s4247_s16, %s4249_s17  }
  0x2f   : > { %p3296_p9 = pnand %p3295_p7, %p3289_p3 }
  0x31   : > { %3299 = shalt.err (!%p3296_p9)
}
  0x32   : > { %s4271_s4 = sld [smem:[#allocation39_spill]]  ;;  %s35_s11 = sadd.s32 1, %s3456_s26 }
  0x33   : > { %s38_s12 = sadd.s32 1, %s3460_s27  ;;  %p36_p11 = scmp.ge.s32.totalorder %s35_s11, 2 }
  0x34   : > { %s47_s13 = sadd.s32 1, %s3444_s23  ;;  %p54_p12 = scmp.ne.s32.totalorder %s3444_s23, %s3440_s22 }
  0x35   : > { %p55_p13 = scmp.eq.s32.totalorder %s3464_s28, 0  ;;  %s4329_s11 = smov (%p36_p11, %s35_s11), 0 }
  0x36   : > { %4272 = sst [smem:[#allocation20_spill]] %s4329_s11  ;;  %s4331_s12 = smov (!%p36_p11, %s38_s12), %s3460_s27 }
  0x37   : > { %s43_s15 = ssub.s32 %s3456_s26, %s4329_s11  ;;  %p3617_p3 = por %p55_p13, %p54_p12 }
  0x38   : > { %3060 = dma.hbm_to_vmem [thread:$0]  (!%p3578_p10), %s4271_s4, 9216, %s240_s14, [#allocation10], %s4247_s16, %s4247_s16, %s4249_s17  }
  0x39   : > { %p40_p10 = scmp.ge.s32.totalorder %s4331_s12, 2  ;;  %p3623_p0 = por %p198_p2, %p54_p12 }
  0x3a   : > { %p3074_p5 = scmp.lt.s32.totalorder %s3464_s28, 4  ;;  %s3629_s19 = sand.u32 1, %s3444_s23  }
  0x3b   : > { %s4274_s14 = scalar_select %p3623_p0, 1, 0 }
  0x3c   : > { %s4333_s12 = smov (%p40_p10, %s4331_s12), 0  ;;  %s2401_s20 = sshll.u32 %s3629_s19, 6 }
  0x3d   : > { %4275 = sst [smem:[#allocation21_spill]] %s4274_s14  ;;  %s42_s30 = ssub.s32 %s3460_s27, %s4333_s12 }
  0x3e   : > { %4276 = sst [smem:[#allocation22_spill]] %s4333_s12  ;;  %s44_s10 = sor.u32 %s43_s15, %s42_s30 }
  0x3f   : > { %s2546_s16 = sshll.u32 %s3456_s26, 4  ;;  %p45_p2 = scmp.eq.s32.totalorder %s44_s10, 0 }
  0x40   : > { %s2404_s17 = sshll.u32 %s3460_s27, 5  ;;  %s260_s4 = scalar_lea.vmem [#allocation3], %s2401_s20 }
  0x41   : > { %s267_s2 = sadd.s32 %s2546_s16, %s2404_s17  ;;  %s270_s11 = sshll.u32 %s260_s4, 4  ;;  %s271_s11 = int_to_ptr.vmem [resolvable:$true] %s270_s11 }
  0x42   : > { %s3639_s8 = scalar_select %p45_p2, %s3444_s23, %s47_s13  }
  0x43   : > { %s2405_s21 = sshll.u32 %s267_s2, 6  ;;  %s4278_s0 = sld [smem:[#allocation37_spill]] }
  0x44   : > { %4277 = sst [smem:[#allocation23_spill]] %s3639_s8  ;;  %p3648_p7 = pnand %p3074_p5, %p3617_p3 }
  0x45   : > { %s280_s15 = sand.u32 1, %s3464_s28   ;;  %s2406_s16 = sshll.u32 %s3629_s19, 4 }
  0x46   : > { %s257_s17 = scalar_lea.sflag [#allocation4], %s3629_s19  ;;  %p3302_p9 = pneg %p3648_p7 }
  0x47   : > { %s3313_s4 = scalar_lea.vmem %s271_s11, 1024  ;;  %s3470_s2 = smov [#allocation3]  }
  0x48   : > { %p3314_p11 = scmp.ne.s32.totalorder %s271_s11, %s3313_s4  ;;  %s3318_s6 = sshll.u32 %s3470_s2, 4  ;;  %s3319_s6 = int_to_ptr.vmem [resolvable:$false] %s3318_s6 }
  0x49   : > { %s269_s25 = scalar_lea.hbm %s4278_s0, %s2405_s21  ;;  %s3320_s21 = scalar_lea.vmem %s3319_s6, 2048 }
  0x4a   : > { %p3316_p12 = pnand %p3314_p11, %p3302_p9  ;;  %p3321_p3 = scmp.lt.s32.totalorder %s271_s11, %s3319_s6 }
  0x4b   : > { %p3322_p10 = scmp.lt.s32.totalorder %s3320_s21, %s3313_s4 }
  0x4c   : > { %p3317_p13 = pneg %p3316_p12 }
  0x4d   : > { %p3323_p5 = por %p3322_p10, %p3321_p3 }
  0x4f   : > { %p3324_p2 = pnand %p3323_p5, %p3317_p13 }
  0x51   : > { %3327 = shalt.err (!%p3324_p2)
}
  0x52   : > { %s4280_s13 = smov 4   ;;  %s4281_s18 = smov 64  }
  0x53   : > { %3064 = dma.hbm_to_vmem [thread:$0]  (!%p3648_p7), %s269_s25, 1024, %s271_s11, %s257_s17, %s4281_s18, %s4281_s18, %s4280_s13  }
  0x54   : > { %s2547_s14 = sshll.u32 %s3456_s26, 2  ;;  %s2409_s19 = sshll.u32 %s3460_s27, 3 }
  0x55   : > { %s284_s20 = scalar_lea.vmem [#allocation6], %s2406_s16  ;;  %s291_s10 = sadd.s32 %s2547_s14, %s2409_s19 }
  0x56   : > { %s294_s30 = sshll.u32 %s284_s20, 4  ;;  %s2410_s2 = sshll.u32 %s291_s10, 6  ;;  %s295_s30 = int_to_ptr.vmem [resolvable:$true] %s294_s30 }
  0x57   : > { %s293_s21 = scalar_lea.hbm %s4241_s1, %s2410_s2  ;;  %s281_s0 = scalar_lea.sflag [#allocation7], %s280_s15 }
  0x58   : > { %s3341_s12 = scalar_lea.vmem %s295_s30, 256  ;;  %s3471_s8 = smov [#allocation6]  }
  0x59   : > { %p3342_p11 = scmp.ne.s32.totalorder %s295_s30, %s3341_s12  ;;  %s3346_s25 = sshll.u32 %s3471_s8, 4  ;;  %s3347_s25 = int_to_ptr.vmem [resolvable:$false] %s3346_s25 }
  0x5a   : > { %s3348_s11 = scalar_lea.vmem %s3347_s25, 512  ;;  %p3349_p3 = scmp.lt.s32.totalorder %s295_s30, %s3347_s25 }
  0x5b   : > { %p3344_p12 = pnand %p3342_p11, %p3302_p9  ;;  %p3350_p10 = scmp.lt.s32.totalorder %s3348_s11, %s3341_s12 }
  0x5d   : > { %p3345_p13 = pneg %p3344_p12  ;;  %p3351_p5 = por %p3350_p10, %p3349_p3 }
  0x5f   : > { %p3352_p2 = pnand %p3351_p5, %p3345_p13 }
  0x61   : > { %3355 = shalt.err (!%p3352_p2)
}
  0x62   : > { %3067 = dma.hbm_to_vmem [thread:$0]  (!%p3648_p7), %s293_s21, 256, %s295_s30, %s281_s0, %s4281_s18, %s4281_s18, %s4280_s13  }
  0x63   : > { %306 = sbr.rel (%p3570_p8) target bundleno = 743 (0x2e7), region = 44 }
  0x68   : > { %s3681_s15 = sand.u32 1, %s3440_s22  }
  0x69   : > { %s2412_s8 = sshll.u32 %s3681_s15, 6  ;;  %s309_s12 = scalar_lea.sflag [#allocation4], %s3681_s15 }
  0x6a   : > { %s3685_s16 = scalar_lea.vmem [#allocation3], %s2412_s8 }
  0x6b   : > { %3415 = dma.done.wait (%p3560_p4), %s309_s12, 1024  }
  0x6c   : > { %3417 = vsyncadd (%p3560_p4), %s309_s12, 4294966272  ;;  %s317_s0 = sand.u32 1, %s3551_s29   ;;  %s2413_s5 = sshll.u32 %s3681_s15, 4 }
  0x6d   : > { %s318_s9 = scalar_lea.sflag [#allocation7], %s317_s0  ;;  %s3693_s17 = scalar_lea.vmem [#allocation6], %s2413_s5 }
  0x6e   : > { %3419 = dma.done.wait (%p3560_p4), %s318_s9, 256  }
  0x6f   : > { %3421 = vsyncadd (%p3560_p4), %s318_s9, 4294967040 }
  0x70   : > { %3423 = dma.done.wait (%p61_p1), [#allocation7], 1024  }
  0x71   : > { %3425 = vsyncadd (%p61_p1), [#allocation7], 4294966272 }
  0x72   : > { %3427 = dma.done.wait (%p61_p1), [#allocation10], 9216  }
  0x73   : > { %3429 = vsyncadd (%p61_p1), [#allocation10], 4294958080  ;;  %v3148_v0 = vld [vmem:[#allocation8 + $0x38] sm:$0xff]   ;;  %v3149_v1 = vld [vmem:[#allocation8 + $0x30] sm:$0xff]   ;;  %p767_p1 = scmp.lt.s32.totalorder %s3448_s24, 1  ;;  %p765_p4 = scmp.gt.s32.totalorder %s3448_s24, 0 }
  0x74   : > { %2892 = vmatprep.subr.bf16.mxu0 %v3148_v0  ;;  %2924 = vmatprep.subr.bf16.mxu1 %v3148_v0  ;;  %v3150_v2 = vld [vmem:[#allocation8 + $0x28] sm:$0xff]   ;;  %v3151_v3 = vld [vmem:[#allocation8 + $0x20] sm:$0xff]   ;;  %v3152_v5 = vld [vmem:[#allocation8 + $0x18] sm:$0xff]   ;;  %vm947_vm0 = vsmask.f32 256  ;;  %vm946_vm1 = vcmask 1040384  }
  0x75   : > { %2893 = vmatpush3.bf16.msra.mxu0 %v3148_v0  ;;  %2925 = vmatpush3.bf16.msra.mxu1 %v3148_v0  ;;  %v3156_v4 = vld [vmem:[%s3685_s16] sm:$0xff]   ;;  %v3153_v6 = vld [vmem:[#allocation8 + $0x10] sm:$0xff]   ;;  %v3154_v8 = vld [vmem:[#allocation8 + $0x8] sm:$0xff]   ;;  %s3727_s13 = scalar_select %p767_p1, 1.0, 0.0  ;;  %vm989_vm2 = vcmask 1047552  }
  0x76   : > { %2894 = vmatprep.subr.bf16.mxu0 %v3149_v1  ;;  %2926 = vmatprep.subr.bf16.mxu1 %v3149_v1  ;;  %v3164_v7 = vld [vmem:[%s3693_s17] sm:$0xff]   ;;  %v3166_v10 = vld [vmem:[#allocation9 + $0x138] sm:$0xff]   ;;  %v3157_v12 = vld [vmem:[%s3685_s16 + $0x8] sm:$0xff]   ;;  %s3730_s18 = scalar_select %p765_p4, 1.0, 0.0 }
  0x77   : > { %2908 = vmatprep.mubr.bf16.mxu0 %v3156_v4  ;;  %2940 = vmatprep.mubr.bf16.mxu1 %v3164_v7  ;;  %v3155_v9 = vld [vmem:[#allocation8] sm:$0xff]   ;;  %v3168_v11 = vld [vmem:[#allocation9 + $0x178] sm:$0xff]   ;;  %v3158_v14 = vld [vmem:[%s3685_s16 + $0x10] sm:$0xff]   ;;  %v782_v57 = vstv %s3727_s13  ;;  %vm990_vm3 = vsmask.f32 7424  ;;  %s4299_s20 = sld [smem:[#allocation40_spill]] }
  0x78   : > { %v3165_v13 = vld [vmem:[%s3693_s17 + $0x8] sm:$0xff]   ;;  %v3160_v17 = vld [vmem:[%s3685_s16 + $0x20] sm:$0xff]   ;;  %v3162_v19 = vld [vmem:[%s3685_s16 + $0x30] sm:$0xff]   ;;  %v769_v59 = vstv %s3730_s18  ;;  %s2416_s30 = sshll.u32 %s3681_s15, 7  ;;  %s4312_s2 = sld [smem:[#allocation18_spill]] }
  0x79   : > { %2895 = vmatpush3.bf16.msra.mxu0 %v3149_v1  ;;  %2927 = vmatpush3.bf16.msra.mxu1 %v3149_v1  ;;  %v3167_v15 = vld [vmem:[#allocation9 + $0xf8] sm:$0xff]   ;;  %v3161_v18 = vld [vmem:[%s3685_s16 + $0x28] sm:$0xff]   ;;  %v3169_v21 = vld [vmem:[#allocation9 + $0x130] sm:$0xff]   ;;  %s4102_s10 = scalar_lea.vmem [#allocation11], %s2416_s30  ;;  %s2568_s4 = sshll.u32 %s3448_s24, 4 }
  0x7a   : > { %2896 = vmatprep.subr.bf16.mxu0 %v3150_v2  ;;  %2928 = vmatprep.subr.bf16.mxu1 %v3150_v2  ;;  %v3159_v16 = vld [vmem:[%s3685_s16 + $0x18] sm:$0xff]   ;;  %v3170_v22 = vld [vmem:[#allocation9 + $0xf0] sm:$0xff]   ;;  %v3172_v24 = vld [vmem:[#allocation9 + $0x128] sm:$0xff]   ;;  %s2260_s8 = sshll.u32 %s4102_s10, 4  ;;  %s2244_s5 = scalar_lea.sflag [#allocation5], %s3681_s15  ;;  %s4186_s8 = int_to_ptr.vmem [resolvable:$true] %s2260_s8 }
  0x7b   : > { %v3163_v20 = vld [vmem:[%s3685_s16 + $0x38] sm:$0xff]   ;;  %v3171_v23 = vld [vmem:[#allocation9 + $0x170] sm:$0xff]   ;;  %v3173_v25 = vld [vmem:[#allocation9 + $0xe8] sm:$0xff]   ;;  %s4315_s16 = sld [smem:[#allocation41_spill]]  ;;  %s3356_s9 = scalar_lea.vmem %s4186_s8, 2048 }
  0x7c   : > { %v3174_v26 = vld [vmem:[#allocation9 + $0x168] sm:$0xff]   ;;  %v3175_v27 = vld [vmem:[#allocation9 + $0x120] sm:$0xff]   ;;  %v3178_v30 = vld [vmem:[#allocation9 + $0x118] sm:$0xff]   ;;  %p3357_p8 = scmp.ne.s32.totalorder %s4186_s8, %s3356_s9  ;;  %s3472_s17 = smov [#allocation11]  }
  0x7d   : > { %2897 = vmatpush3.bf16.msra.mxu0 %v3150_v2  ;;  %2929 = vmatpush3.bf16.msra.mxu1 %v3150_v2  ;;  %v3176_v28 = vld [vmem:[#allocation9 + $0xe0] sm:$0xff]   ;;  %v3179_v31 = vld [vmem:[#allocation9 + $0xd8] sm:$0xff]   ;;  %v3181_v33 = vld [vmem:[#allocation9 + $0x110] sm:$0xff]   ;;  %s3360_s29 = sshll.u32 %s3472_s17, 4  ;;  %s3361_s29 = int_to_ptr.vmem [resolvable:$false] %s3360_s29 }
  0x7e   : > { %2898 = vmatprep.subr.bf16.mxu0 %v3151_v3  ;;  %2930 = vmatprep.subr.bf16.mxu1 %v3151_v3  ;;  %v3177_v29 = vld [vmem:[#allocation9 + $0x160] sm:$0xff]   ;;  %v3180_v32 = vld [vmem:[#allocation9 + $0x158] sm:$0xff]   ;;  %v3182_v34 = vld [vmem:[#allocation9 + $0xd0] sm:$0xff]   ;;  %s2542_s6 = sshll.u32 %s4312_s2, 5  ;;  %p3358_p7 = pnand %p3357_p8, %p3623_p0 }
  0x7f   : > { %v3183_v35 = vld [vmem:[#allocation9 + $0x150] sm:$0xff]   ;;  %v3184_v36 = vld [vmem:[#allocation9 + $0x108] sm:$0xff]   ;;  %v3188_v39 = vld [vmem:[#allocation9 + $0x100] sm:$0xff]   ;;  %s2257_s21 = sadd.s32 %s2568_s4, %s2542_s6  ;;  %s3362_s7 = scalar_lea.vmem %s3361_s29, 4096 }
  0x80   : > { %v3185_v37 = vld [vmem:[#allocation9 + $0xc8] sm:$0xff]   ;;  %v3189_v40 = vld [vmem:[#allocation9 + $0xc0] sm:$0xff]   ;;  %v3193_v42 = vld [vmem:[#allocation9 + $0x78] sm:$0xff]   ;;  %s2543_s11 = sshll.u32 %s2257_s21, 7  ;;  %p3359_p9 = pneg %p3358_p7 }
  0x81   : > { %2899 = vmatpush3.bf16.msra.mxu0 %v3151_v3  ;;  %2931 = vmatpush3.bf16.msra.mxu1 %v3151_v3  ;;  %v3187_v38 = vld [vmem:[#allocation9 + $0x148] sm:$0xff]   ;;  %v3190_v41 = vld [vmem:[#allocation9 + $0x140] sm:$0xff]   ;;  %v3717_v43 = vld [vmem:[#allocation9 + $0xb8] sm:$0xff]   ;;  %s4184_s0 = scalar_lea.hbm %s4315_s16, %s2543_s11  ;;  %p3363_p11 = scmp.lt.s32.totalorder %s4186_s8, %s3361_s29 }
  0x82   : > { %2900 = vmatprep.subr.bf16.mxu0 %v3152_v5  ;;  %2932 = vmatprep.subr.bf16.mxu1 %v3152_v5  ;;  %v3725_v45 = vld [vmem:[%s4243_s3] ss:$0 sm:$0xff]  ;;  %vm3760_vm4 = vmand %vm946_vm1, %vm947_vm0  ;;  %p3364_p12 = scmp.lt.s32.totalorder %s3362_s7, %s3356_s9 }
  0x83   : > { %vm3768_vm5 = vmand %vm989_vm2, %vm990_vm3 }
  0x84   : > { %p3365_p13 = por %p3364_p12, %p3363_p11 }
  0x85   : > { %2901 = vmatpush3.bf16.msra.mxu0 %v3152_v5  ;;  %2933 = vmatpush3.bf16.msra.mxu1 %v3152_v5 }
  0x86   : > { %2902 = vmatprep.subr.bf16.mxu0 %v3153_v6  ;;  %2934 = vmatprep.subr.bf16.mxu1 %v3153_v6  ;;  %p3366_p3 = pnand %p3365_p13, %p3359_p9 }
  0x89   : > { %2903 = vmatpush3.bf16.msra.mxu0 %v3153_v6  ;;  %2935 = vmatpush3.bf16.msra.mxu1 %v3153_v6 }
  0x8a   : > { %2904 = vmatprep.subr.bf16.mxu0 %v3154_v8  ;;  %2936 = vmatprep.subr.bf16.mxu1 %v3154_v8 }
  0x8d   : > { %2905 = vmatpush3.bf16.msra.mxu0 %v3154_v8  ;;  %2937 = vmatpush3.bf16.msra.mxu1 %v3154_v8 }
  0x8e   : > { %2906 = vmatprep.subr.bf16.mxu0 %v3155_v9  ;;  %2938 = vmatprep.subr.bf16.mxu1 %v3155_v9 }
  0x91   : > { %2907 = vmatpush3.bf16.msra.mxu0 %v3155_v9  ;;  %2939 = vmatpush3.bf16.msra.mxu1 %v3155_v9 }
  0x92   : > { %2652 = vmatprep.subr.bf16.mxu0 %v3166_v10  ;;  %2944 = vmatprep.subr.bf16.mxu1 %v3168_v11 }
  0x94   : > { %2909 = vmatmul.mubr.bf16.vlgmr.msra.gmra.mxu0 %v3157_v12  ;;  %2941 = vmatmul.mubr.bf16.vlgmr.msra.gmra.mxu1 %v3165_v13 }
  0x95   : > { %2912 = vmatprep.mubr.bf16.mxu0 %v3158_v14  ;;  %2653 = vmatpush3.bf16.msra.mxu0 %v3167_v15 }
  0x96   : > { %2945 = vmatpush3.bf16.msra.mxu1 %v3168_v11  ;;  %2654 = vmatprep.subr.bf16.mxu0 %v3169_v21 }
  0x97   : > { %2946 = vmatprep.subr.bf16.mxu1 %v3171_v23 }
  0x99   : > { %2655 = vmatpush3.bf16.msra.mxu0 %v3170_v22 }
  0x9a   : > { %2947 = vmatpush3.bf16.msra.mxu1 %v3171_v23  ;;  %2656 = vmatprep.subr.bf16.mxu0 %v3172_v24 }
  0x9b   : > { %2948 = vmatprep.subr.bf16.mxu1 %v3174_v26 }
  0x9c   : > { %2913 = vmatmul.mubr.bf16.gmra.mxu0 %v3159_v16 }
  0x9d   : > { %2916 = vmatprep.mubr.bf16.mxu0 %v3160_v17  ;;  %2657 = vmatpush3.bf16.msra.mxu0 %v3173_v25 }
  0x9e   : > { %2949 = vmatpush3.bf16.msra.mxu1 %v3174_v26  ;;  %2658 = vmatprep.subr.bf16.mxu0 %v3175_v27 }
  0x9f   : > { %2950 = vmatprep.subr.bf16.mxu1 %v3177_v29 }
  0xa1   : > { %2659 = vmatpush3.bf16.msra.mxu0 %v3176_v28 }
  0xa2   : > { %2951 = vmatpush3.bf16.msra.mxu1 %v3177_v29  ;;  %2660 = vmatprep.subr.bf16.mxu0 %v3178_v30 }
  0xa3   : > { %2952 = vmatprep.subr.bf16.mxu1 %v3180_v32 }
  0xa4   : > { %2917 = vmatmul.mubr.bf16.gmra.mxu0 %v3161_v18 }
  0xa5   : > { %2920 = vmatprep.mubr.bf16.mxu0 %v3162_v19  ;;  %2661 = vmatpush3.bf16.msra.mxu0 %v3179_v31 }
  0xa6   : > { %2953 = vmatpush3.bf16.msra.mxu1 %v3180_v32  ;;  %2662 = vmatprep.subr.bf16.mxu0 %v3181_v33 }
  0xa7   : > { %2954 = vmatprep.subr.bf16.mxu1 %v3183_v35 }
  0xa9   : > { %2663 = vmatpush3.bf16.msra.mxu0 %v3182_v34 }
  0xaa   : > { %2955 = vmatpush3.bf16.msra.mxu1 %v3183_v35  ;;  %2664 = vmatprep.subr.bf16.mxu0 %v3184_v36 }
  0xab   : > { %2956 = vmatprep.subr.bf16.mxu1 %v3187_v38 }
  0xac   : > { %2921 = vmatmul.mubr.bf16.gmra.mxu0 %v3163_v20 }
  0xad   : > { %2665 = vmatpush3.bf16.msra.mxu0 %v3185_v37 }
  0xae   : > { %2957 = vmatpush3.bf16.msra.mxu1 %v3187_v38  ;;  %2666 = vmatprep.subr.bf16.mxu0 %v3188_v39 }
  0xaf   : > { %2958 = vmatprep.subr.bf16.mxu1 %v3190_v41 }
  0xb1   : > { %2667 = vmatpush3.bf16.msra.mxu0 %v3189_v40 }
  0xb2   : > { %2959 = vmatpush3.bf16.msra.mxu1 %v3190_v41  ;;  %2976 = vmatprep.subr.bf16.mxu0 %v3717_v43 }
  0xb3   : > { %2732 = vmatprep.subr.bf16.mxu1 %v3193_v42 }
 0x154   : > { %v2910_v44 = vpop.f32.mrf.mxu0  ;;  %v2942_v46 = vpop.f32.mrf.mxu1 }
 0x155   : > { %v755_v47 = vadd.f32 %v2942_v46, %v3725_v45  ;;  %v545_v50 = vadd.f32 %v2910_v44, %v3725_v45 }
 0x156   : > { %v536_v48 = vpop.f32.mrf.mxu0  ;;  %v746_v49 = vpop.f32.mrf.mxu1 }
 0x157   : > { %v747_v51 = vadd.f32 %v3725_v45, %v746_v49  ;;  %v537_v52 = vadd.f32 %v3725_v45, %v536_v48  ;;  %v763_v54 = vmax.f32 %v755_v47, 0.0  ;;  %v601_v63 = vmax.f32 %v545_v50, 0.0 }
 0x158   : > { %v2911_v53 = vpop.f32.mrf.mxu0  ;;  %v2943_v55 = vpop.f32.mrf.mxu1 }
 0x159   : > { %v548_v56 = vadd.f32 %v2911_v53, %v3725_v45  ;;  %v761_v58 = vmax.f32 %v747_v51, 0.0  ;;  %v758_v61 = vadd.f32 %v2943_v55, %v3725_v45  ;;  %v599_v3 = vmax.f32 %v537_v52, 0.0 }
 0x15a   : > { %v539_v60 = vpop.f32.mrf.mxu0  ;;  %v749_v62 = vpop.f32.mrf.mxu1  ;;  %v783_v5 = vmul.f32 %v782_v57, %v763_v54 }
 0x15b   : > { %v602_v0 = vmax.f32 %v548_v56, 0.0  ;;  %v540_v1 = vadd.f32 %v3725_v45, %v539_v60  ;;  %v750_v2 = vadd.f32 %v3725_v45, %v749_v62  ;;  %v770_v6 = vmul.f32 %v769_v59, %v761_v58 }
 0x15c   : > { %v2914_v4 = vpop.f32.mrf.mxu0  ;;  %v764_v7 = vmax.f32 %v758_v61, 0.0 }
 0x15d   : > { %v2577_v8 = vpack.c.bf16 %v602_v0, %v601_v63  ;;  %v600_v9 = vmax.f32 %v540_v1, 0.0  ;;  %v561_v10 = vadd.f32 %v2914_v4, %v3725_v45  ;;  %v762_v11 = vmax.f32 %v750_v2, 0.0  ;;  %v3194_v1 = vld [vmem:[#allocation9 + $0x38] sm:$0xff]   ;;  %v3197_v2 = vld [vmem:[#allocation9 + $0xb0] sm:$0xff]  }
 0x15e   : > { %v552_v12 = vpop.f32.mrf.mxu0  ;;  %v784_v13 = vmul.f32 %v782_v57, %v764_v7 }
 0x15f   : > { %2619 = vst [vmem:[#allocation2 + $0x10] sm:$0xff] %v2577_v8   ;;  %v2572_v14 = vpack.c.bf16 %v600_v9, %v599_v3  ;;  %v553_v15 = vadd.f32 %v3725_v45, %v552_v12  ;;  %v771_v16 = vmul.f32 %v769_v59, %v762_v11  ;;  %v605_v19 = vmax.f32 %v561_v10, 0.0  ;;  %v3195_v8 = vld [vmem:[#allocation9 + $0x70] sm:$0xff]  }
 0x160   : > { %v2915_v17 = vpop.f32.mrf.mxu0  ;;  %v2617_v18 = vpack.c.bf16 %v784_v13, %v783_v5 }
 0x161   : > { %2573 = vst [vmem:[#allocation2 + $0x8] sm:$0xff] %v2572_v14   ;;  %v564_v20 = vadd.f32 %v2915_v17, %v3725_v45  ;;  %v2612_v21 = vpack.c.bf16 %v771_v16, %v770_v6  ;;  %v603_v23 = vmax.f32 %v553_v15, 0.0 }
 0x162   : > { %v555_v22 = vpop.f32.mrf.mxu0  ;;  %2618 = vst [vmem:[#allocation2 + $0x48] sm:$0xff] %v2617_v18  }
 0x163   : > { %v606_v24 = vmax.f32 %v564_v20, 0.0  ;;  %v556_v25 = vadd.f32 %v3725_v45, %v555_v22  ;;  %2613 = vst [vmem:[#allocation2] sm:$0xff] %v2612_v21  }
 0x164   : > { %v2918_v26 = vpop.f32.mrf.mxu0 }
 0x165   : > { %v2587_v27 = vpack.c.bf16 %v606_v24, %v605_v19  ;;  %v604_v28 = vmax.f32 %v556_v25, 0.0  ;;  %v577_v29 = vadd.f32 %v2918_v26, %v3725_v45  ;;  %v3204_v19 = vld [vmem:[#allocation9 + $0xa8] sm:$0xff]  }
 0x166   : > { %v568_v30 = vpop.f32.mrf.mxu0  ;;  %v3746_v31 = vld [vmem:[#allocation2 + $0x10] sm:$0xff]  }
 0x167   : > { %2621 = vst [vmem:[#allocation2 + $0x20] sm:$0xff] %v2587_v27   ;;  %v2582_v32 = vpack.c.bf16 %v604_v28, %v603_v23  ;;  %v569_v33 = vadd.f32 %v3725_v45, %v568_v30  ;;  %v609_v36 = vmax.f32 %v577_v29, 0.0  ;;  %v884_v38 = vshll.u32 %v3746_v31, 16  ;;  %v3201_v30 = vld [vmem:[#allocation9 + $0x28] sm:$0xff]  }
 0x168   : > { %v2919_v34 = vpop.f32.mrf.mxu0  ;;  %v3749_v35 = vld [vmem:[#allocation2 + $0x8] sm:$0xff]   ;;  %v881_v42 = vshrl.u32 %v3746_v31, 16 }
 0x169   : > { %2620 = vst [vmem:[#allocation2 + $0x18] sm:$0xff] %v2582_v32   ;;  %v580_v37 = vadd.f32 %v2919_v34, %v3725_v45  ;;  %1285 = vmatprep.mubr.bf16.mxu0 %v3749_v35  ;;  %v874_v40 = vshrl.u32 %v3749_v35, 16  ;;  %v877_v41 = vshll.u32 %v3749_v35, 16  ;;  %v607_v44 = vmax.f32 %v569_v33, 0.0  ;;  %v3211_v33 = vld [vmem:[#allocation9 + $0xa0] sm:$0xff]  }
 0x16a   : > { %v571_v39 = vpop.f32.mrf.mxu0  ;;  %v963_v48 = vrot.slane %v884_v38, 1  ;;  %v883_v60 = vrot.slane %v881_v42, 7 }
 0x16b   : > { %v610_v46 = vmax.f32 %v580_v37, 0.0  ;;  %v572_v47 = vadd.f32 %v3725_v45, %v571_v39  ;;  %v876_v50 = vrot.slane %v874_v40, 7  ;;  %v961_v51 = vrot.slane %v877_v41, 1 }
 0x16c   : > { %v2922_v49 = vpop.f32.mrf.mxu0  ;;  %v964_v59 = vor.u32 %v963_v48, %v881_v42  ;;  %v886_v14 = vor.u32 %v884_v38, %v883_v60  ;;  %v3202_v38 = vld [vmem:[#allocation9 + $0x60] sm:$0xff]   ;;  %v3220_v60 = vld [vmem:[#allocation9 + $0x90] sm:$0xff]  }
 0x16d   : > { %v2597_v52 = vpack.c.bf16 %v610_v46, %v609_v36  ;;  %v608_v53 = vmax.f32 %v572_v47, 0.0  ;;  %v593_v54 = vadd.f32 %v2922_v49, %v3725_v45  ;;  %v879_v57 = vor.u32 %v877_v41, %v876_v50  ;;  %v3203_v47 = vld [vmem:[#allocation9 + $0x20] sm:$0xff]   ;;  %v3218_v49 = vld [vmem:[#allocation9 + $0x98] sm:$0xff]  }
 0x16e   : > { %v584_v56 = vpop.f32.mrf.mxu0  ;;  %v962_v58 = vor.u32 %v961_v51, %v874_v40  ;;  %v3764_v61 = vld [vmem:[#allocation2 + $0x20] sm:$0xff]   ;;  %v3790_v13 = vsel %vm3768_vm5, %v964_v59, 0  ;;  %v3803_v28 = vsel %vm3760_vm4, 0, %v886_v14  ;;  %v3207_v51 = vld [vmem:[#allocation9 + $0x58] sm:$0xff]  }
 0x16f   : > { %2623 = vst [vmem:[#allocation2 + $0x30] sm:$0xff] %v2597_v52   ;;  %v2592_v62 = vpack.c.bf16 %v608_v53, %v607_v44  ;;  %v585_v63 = vadd.f32 %v3725_v45, %v584_v56  ;;  %v3774_v4 = vsel %vm3760_vm4, 0, %v879_v57  ;;  %v613_v6 = vmax.f32 %v593_v54, 0.0  ;;  %v3208_v57 = vld [vmem:[#allocation9 + $0x18] sm:$0xff]   ;;  %v3839_v59 = vld [vmem:[#allocation2] sm:$0xff]  }
 0x170   : > { %v2923_v3 = vpop.f32.mrf.mxu0  ;;  %v3778_v5 = vsel %vm3768_vm5, %v962_v58, 0  ;;  %1286 = vmatmul.mubr.bf16.vlgmr.msra.gmra.mxu0 %v3774_v4  ;;  %v3783_v9 = vld [vmem:[#allocation2 + $0x18] sm:$0xff]   ;;  %v898_v10 = vshll.u32 %v3764_v61, 16  ;;  %v895_v20 = vshrl.u32 %v3764_v61, 16 }
 0x171   : > { %2622 = vst [vmem:[#allocation2 + $0x28] sm:$0xff] %v2592_v62   ;;  %v596_v7 = vadd.f32 %v2923_v3, %v3725_v45  ;;  %2960 = vmatprep.mubr.bf16.mxu1 %v3778_v5  ;;  %v611_v11 = vmax.f32 %v585_v63, 0.0  ;;  %2977 = vmatpush3.bf16.msra.mxu0 %v3717_v43  ;;  %v888_v17 = vshrl.u32 %v3783_v9, 16  ;;  %v891_v18 = vshll.u32 %v3783_v9, 16  ;;  %v3196_v43 = vld [vmem:[#allocation9 + $0x30] sm:$0xff]  }
 0x172   : > { %v587_v12 = vpop.f32.mrf.mxu0  ;;  %1293 = vmatprep.mubr.bf16.mxu0 %v3746_v31  ;;  %2961 = vmatmul.mubr.bf16.vlgmr.msra.gmra.mxu1 %v3790_v13  ;;  %v967_v21 = vrot.slane %v898_v10, 1  ;;  %v897_v58 = vrot.slane %v895_v20, 7 }
 0x173   : > { %v614_v15 = vmax.f32 %v596_v7, 0.0  ;;  %v588_v16 = vadd.f32 %v3725_v45, %v587_v12  ;;  %2978 = vmatprep.subr.bf16.mxu0 %v3197_v2  ;;  %2733 = vmatpush3.bf16.msra.mxu1 %v3194_v1  ;;  %v965_v24 = vrot.slane %v891_v18, 1  ;;  %v3200_v45 = vld [vmem:[#allocation9 + $0x68] sm:$0xff]   ;;  %v890_v32 = vrot.slane %v888_v17, 7  ;;  %v3209_v1 = vld [vmem:[#allocation9 + $0x50] sm:$0xff]  }
 0x174   : > { %2734 = vmatprep.subr.bf16.mxu1 %v3195_v8  ;;  %v968_v25 = vor.u32 %v967_v21, %v895_v20  ;;  %v3210_v12 = vld [vmem:[#allocation9 + $0x10] sm:$0xff]   ;;  %v900_v14 = vor.u32 %v898_v10, %v897_v58 }
 0x175   : > { %v2607_v22 = vpack.c.bf16 %v614_v15, %v613_v6  ;;  %v612_v23 = vmax.f32 %v588_v16, 0.0  ;;  %2979 = vmatpush3.bf16.msra.mxu0 %v3197_v2  ;;  %v966_v29 = vor.u32 %v965_v24, %v888_v17  ;;  %v893_v44 = vor.u32 %v891_v18, %v890_v32  ;;  %v3221_v16 = vld [vmem:[#allocation9 + $0x88] sm:$0xff]   ;;  %v3223_v32 = vld [vmem:[#allocation9 + $0x1f8] sm:$0xff]  }
 0x176   : > { %v3799_v26 = vld [vmem:[#allocation2 + $0x30] sm:$0xff]   ;;  %2980 = vmatprep.subr.bf16.mxu0 %v3204_v19  ;;  %v3807_v34 = vsel %vm3768_vm5, %v968_v25, 0  ;;  %v3869_v10 = vsel %vm3760_vm4, 0, %v900_v14  ;;  %v3235_v14 = vld [vmem:[#allocation9 + $0x1d8] sm:$0xff]  }
 0x177   : > { %2625 = vst [vmem:[#allocation2 + $0x40] sm:$0xff] %v2607_v22   ;;  %v2602_v27 = vpack.c.bf16 %v612_v23, %v611_v11  ;;  %2735 = vmatpush3.bf16.msra.mxu1 %v3196_v43  ;;  %v3814_v37 = vsel %vm3768_vm5, %v966_v29, 0  ;;  %v909_v39 = vshrl.u32 %v3799_v26, 16  ;;  %v912_v40 = vshll.u32 %v3799_v26, 16  ;;  %v3215_v23 = vld [vmem:[#allocation9 + $0x8] sm:$0xff]   ;;  %v3222_v25 = vld [vmem:[#allocation9 + $0x80] sm:$0xff]  }
 0x178   : > { %v3809_v36 = vld [vmem:[#allocation2 + $0x28] sm:$0xff]   ;;  %1294 = vmatmul.mubr.bf16.gmra.mxu0 %v3803_v28  ;;  %2736 = vmatprep.subr.bf16.mxu1 %v3200_v45  ;;  %v3833_v54 = vsel %vm3760_vm4, 0, %v893_v44  ;;  %v867_v11 = vshrl.u32 %v3839_v59, 16  ;;  %v870_v43 = vshll.u32 %v3839_v59, 16  ;;  %v3216_v45 = vld [vmem:[#allocation9 + $0x40] sm:$0xff]  }
 0x179   : > { %2624 = vst [vmem:[#allocation2 + $0x38] sm:$0xff] %v2602_v27   ;;  %2964 = vmatprep.mubr.bf16.mxu1 %v3814_v37  ;;  %1301 = vmatprep.mubr.bf16.mxu0 %v3783_v9  ;;  %v902_v41 = vshrl.u32 %v3809_v36, 16  ;;  %v905_v42 = vshll.u32 %v3809_v36, 16  ;;  %v971_v46 = vrot.slane %v912_v40, 1  ;;  %v3217_v27 = vld [vmem:[#allocation9] sm:$0xff]   ;;  %v911_v44 = vrot.slane %v909_v39, 7 }
 0x17a   : > { %2965 = vmatmul.mubr.bf16.gmra.mxu1 %v3807_v34  ;;  %2981 = vmatpush3.bf16.msra.mxu0 %v3204_v19  ;;  %v3214_v19 = vld [vmem:[#allocation9 + $0x48] sm:$0xff]   ;;  %v869_v20 = vrot.slane %v867_v11, 7 }
 0x17b   : > { %2737 = vmatpush3.bf16.msra.mxu1 %v3201_v30  ;;  %v969_v48 = vrot.slane %v905_v42, 1  ;;  %2982 = vmatprep.subr.bf16.mxu0 %v3211_v33  ;;  %v972_v50 = vor.u32 %v971_v46, %v909_v39  ;;  %v904_v24 = vrot.slane %v902_v41, 7  ;;  %v914_v46 = vor.u32 %v912_v40, %v911_v44  ;;  %v3237_v40 = vld [vmem:[#allocation9 + $0x218] sm:$0xff]  }
 0x17c   : > { %2738 = vmatprep.subr.bf16.mxu1 %v3202_v38  ;;  %v872_v30 = vor.u32 %v870_v43, %v869_v20  ;;  %v3245_v20 = vld [vmem:[#allocation9 + $0x180] sm:$0xff]  }
 0x17d   : > { %v970_v52 = vor.u32 %v969_v48, %v902_v41  ;;  %v3837_v56 = vsel %vm3768_vm5, %v972_v50, 0  ;;  %v907_v29 = vor.u32 %v905_v42, %v904_v24  ;;  %v3228_v42 = vld [vmem:[#allocation9 + $0x230] sm:$0xff]   ;;  %v3901_v48 = vsel %vm3760_vm4, 0, %v914_v46 }
 0x17e   : > { %v3829_v53 = vld [vmem:[#allocation2 + $0x40] sm:$0xff]   ;;  %2983 = vmatpush3.bf16.msra.mxu0 %v3211_v33  ;;  %v3225_v33 = vld [vmem:[#allocation9 + $0x238] sm:$0xff]   ;;  %v949_v41 = vsel %vm3760_vm4, 0, %v872_v30 }
 0x17f   : > { %2739 = vmatpush3.bf16.msra.mxu1 %v3203_v47  ;;  %v3843_v62 = vsel %vm3768_vm5, %v970_v52, 0  ;;  %2984 = vmatprep.subr.bf16.mxu0 %v3218_v49  ;;  %v923_v2 = vshrl.u32 %v3829_v53, 16  ;;  %v926_v3 = vshll.u32 %v3829_v53, 16  ;;  %v3888_v38 = vsel %vm3760_vm4, 0, %v907_v29  ;;  %v3231_v47 = vld [vmem:[#allocation9 + $0x228] sm:$0xff]  }
 0x180   : > { %v3845_v63 = vld [vmem:[#allocation2 + $0x38] sm:$0xff]   ;;  %1302 = vmatmul.mubr.bf16.gmra.mxu0 %v3833_v54  ;;  %2968 = vmatprep.mubr.bf16.mxu1 %v3843_v62  ;;  %v959_v52 = vrot.slane %v870_v43, 1  ;;  %v3244_v43 = vld [vmem:[#allocation9 + $0x1c0] sm:$0xff]  }
 0x181   : > { %1309 = vmatprep.mubr.bf16.mxu0 %v3764_v61  ;;  %2740 = vmatprep.subr.bf16.mxu1 %v3207_v51  ;;  %v916_v6 = vshrl.u32 %v3845_v63, 16  ;;  %v919_v7 = vshll.u32 %v3845_v63, 16  ;;  %v975_v8 = vrot.slane %v926_v3, 1  ;;  %v925_v51 = vrot.slane %v923_v2, 7 }
 0x182   : > { %2969 = vmatmul.mubr.bf16.gmra.mxu1 %v3837_v56  ;;  %2985 = vmatpush3.bf16.msra.mxu0 %v3218_v49  ;;  %v3234_v49 = vld [vmem:[#allocation9 + $0x220] sm:$0xff]   ;;  %v960_v58 = vor.u32 %v959_v52, %v867_v11  ;;  %v3230_v11 = vld [vmem:[#allocation9 + $0x1a8] sm:$0xff]  }
 0x183   : > { %2741 = vmatpush3.bf16.msra.mxu1 %v3208_v57  ;;  %v973_v15 = vrot.slane %v919_v7, 1  ;;  %2986 = vmatprep.subr.bf16.mxu0 %v3220_v60  ;;  %v976_v17 = vor.u32 %v975_v8, %v923_v2  ;;  %v918_v39 = vrot.slane %v916_v6, 7  ;;  %v928_v57 = vor.u32 %v926_v3, %v925_v51  ;;  %v3226_v3 = vld [vmem:[#allocation9 + $0x1f0] sm:$0xff]   ;;  %v3229_v8 = vld [vmem:[#allocation9 + $0x1e8] sm:$0xff]  }
 0x184   : > { %2742 = vmatprep.subr.bf16.mxu1 %v3209_v1  ;;  %v992_v2 = vsel %vm3768_vm5, %v960_v58, 0 }
 0x185   : > { %v974_v18 = vor.u32 %v973_v15, %v916_v6  ;;  %v3877_v22 = vsel %vm3768_vm5, %v976_v17, 0  ;;  %v3925_v1 = vsel %vm3760_vm4, 0, %v928_v57  ;;  %v3246_v6 = vld [vmem:[#allocation9 + $0x200] sm:$0xff]   ;;  %v3236_v15 = vld [vmem:[#allocation9 + $0x198] sm:$0xff]   ;;  %v3239_v17 = vld [vmem:[#allocation9 + $0x190] sm:$0xff]  }
 0x186   : > { %2987 = vmatpush3.bf16.msra.mxu0 %v3220_v60  ;;  %v3243_v60 = vld [vmem:[#allocation9 + $0x208] sm:$0xff]  }
 0x187   : > { %2743 = vmatpush3.bf16.msra.mxu1 %v3210_v12  ;;  %v3873_v21 = vsel %vm3768_vm5, %v974_v18, 0  ;;  %2988 = vmatprep.subr.bf16.mxu0 %v3221_v16  ;;  %v3232_v12 = vld [vmem:[#allocation9 + $0x1e0] sm:$0xff]   ;;  %v3241_v18 = vld [vmem:[#allocation9 + $0x1c8] sm:$0xff]  }
 0x188   : > { %1310 = vmatmul.mubr.bf16.gmra.mxu0 %v3869_v10  ;;  %2972 = vmatprep.mubr.bf16.mxu1 %v3873_v21 }
 0x189   : > { %1317 = vmatprep.mubr.bf16.mxu0 %v3809_v36  ;;  %2744 = vmatprep.subr.bf16.mxu1 %v3214_v19  ;;  %v3242_v19 = vld [vmem:[#allocation9 + $0x188] sm:$0xff]  }
 0x18a   : > { %2973 = vmatmul.mubr.bf16.gmra.mxu1 %v3877_v22  ;;  %2989 = vmatpush3.bf16.msra.mxu0 %v3221_v16  ;;  %v3238_v16 = vld [vmem:[#allocation9 + $0x1d0] sm:$0xff]  }
 0x18b   : > { %2745 = vmatpush3.bf16.msra.mxu1 %v3215_v23  ;;  %1623 = vmatprep.mubr.bf16.mxu1 %v3839_v59  ;;  %v3224_v59 = vld [vmem:[#allocation9 + $0x1b8] sm:$0xff]  }
 0x18c   : > { %2746 = vmatprep.subr.bf16.mxu1 %v3216_v45  ;;  %2990 = vmatprep.subr.bf16.mxu0 %v3222_v25 }
 0x18e   : > { %2991 = vmatpush3.bf16.msra.mxu0 %v3222_v25 }
 0x18f   : > { %2747 = vmatpush3.bf16.msra.mxu1 %v3217_v27  ;;  %2812 = vmatprep.subr.bf16.mxu0 %v3223_v32 }
 0x190   : > { %1318 = vmatmul.mubr.bf16.gmra.mxu0 %v3888_v38  ;;  %3008 = vmatprep.subr.bf16.mxu1 %v3225_v33 }
 0x191   : > { %1325 = vmatprep.mubr.bf16.mxu0 %v3799_v26 }
 0x192   : > { %1624 = vmatmul.mubr.bf16.vlgmr.msra.gmra.mxu1 %v949_v41 }
 0x193   : > { %1631 = vmatprep.mubr.bf16.mxu1 %v3749_v35  ;;  %3009 = vmatpush3.bf16.msra.mxu1 %v3225_v33  ;;  %v921_v35 = vor.u32 %v919_v7, %v918_v39  ;;  %v3227_v7 = vld [vmem:[#allocation9 + $0x1b0] sm:$0xff]  }
 0x194   : > { %3010 = vmatprep.subr.bf16.mxu1 %v3228_v42 }
 0x195   : > { %v3911_v50 = vsel %vm3760_vm4, 0, %v921_v35 }
 0x197   : > { %3011 = vmatpush3.bf16.msra.mxu1 %v3228_v42 }
 0x198   : > { %1326 = vmatmul.mubr.bf16.gmra.mxu0 %v3901_v48  ;;  %3012 = vmatprep.subr.bf16.mxu1 %v3231_v47 }
 0x199   : > { %1333 = vmatprep.mubr.bf16.mxu0 %v3845_v63 }
 0x19a   : > { %1632 = vmatmul.mubr.bf16.gmra.mxu1 %v3774_v4  ;;  %v3240_v4 = vld [vmem:[#allocation9 + $0x210] sm:$0xff]  }
 0x19b   : > { %1639 = vmatprep.mubr.bf16.mxu1 %v3746_v31  ;;  %3013 = vmatpush3.bf16.msra.mxu1 %v3231_v47 }
 0x19c   : > { %3014 = vmatprep.subr.bf16.mxu1 %v3234_v49 }
 0x19f   : > { %3015 = vmatpush3.bf16.msra.mxu1 %v3234_v49 }
 0x1a0   : > { %1334 = vmatmul.mubr.bf16.gmra.mxu0 %v3911_v50  ;;  %3016 = vmatprep.subr.bf16.mxu1 %v3237_v40 }
 0x1a1   : > { %1341 = vmatprep.mubr.bf16.mxu0 %v3829_v53 }
 0x1a2   : > { %1640 = vmatmul.mubr.bf16.gmra.mxu1 %v3803_v28 }
 0x1a3   : > { %1647 = vmatprep.mubr.bf16.mxu1 %v3783_v9  ;;  %3017 = vmatpush3.bf16.msra.mxu1 %v3237_v40 }
 0x1a4   : > { %3018 = vmatprep.subr.bf16.mxu1 %v3240_v4 }
 0x1a7   : > { %3019 = vmatpush3.bf16.msra.mxu1 %v3240_v4 }
 0x1a8   : > { %1342 = vmatmul.mubr.bf16.gmra.mxu0 %v3925_v1  ;;  %3020 = vmatprep.subr.bf16.mxu1 %v3243_v60 }
 0x1a9   : > { %2992 = vmatprep.mubr.bf16.mxu0 %v992_v2 }
 0x1aa   : > { %1648 = vmatmul.mubr.bf16.gmra.mxu1 %v3833_v54 }
 0x1ab   : > { %1655 = vmatprep.mubr.bf16.mxu1 %v3764_v61  ;;  %3021 = vmatpush3.bf16.msra.mxu1 %v3243_v60 }
 0x1ac   : > { %3022 = vmatprep.subr.bf16.mxu1 %v3246_v6 }
 0x1af   : > { %3023 = vmatpush3.bf16.msra.mxu1 %v3246_v6 }
 0x1b0   : > { %2993 = vmatmul.mubr.bf16.vlgmr.msra.gmra.mxu0 %v3778_v5  ;;  %v3233_v5 = vld [vmem:[#allocation9 + $0x1a0] sm:$0xff]  }
 0x1b1   : > { %2813 = vmatpush3.bf16.msra.mxu0 %v3224_v59  ;;  %2996 = vmatprep.mubr.bf16.mxu0 %v3790_v13 }
 0x1b2   : > { %1656 = vmatmul.mubr.bf16.gmra.mxu1 %v3869_v10  ;;  %2814 = vmatprep.subr.bf16.mxu0 %v3226_v3 }
 0x1b3   : > { %1663 = vmatprep.mubr.bf16.mxu1 %v3809_v36 }
 0x1b5   : > { %2815 = vmatpush3.bf16.msra.mxu0 %v3227_v7 }
 0x1b6   : > { %2816 = vmatprep.subr.bf16.mxu0 %v3229_v8 }
 0x1b8   : > { %2997 = vmatmul.mubr.bf16.gmra.mxu0 %v3814_v37 }
 0x1b9   : > { %2817 = vmatpush3.bf16.msra.mxu0 %v3230_v11  ;;  %3000 = vmatprep.mubr.bf16.mxu0 %v3807_v34 }
 0x1ba   : > { %1664 = vmatmul.mubr.bf16.gmra.mxu1 %v3888_v38  ;;  %2818 = vmatprep.subr.bf16.mxu0 %v3232_v12 }
 0x1bb   : > { %1671 = vmatprep.mubr.bf16.mxu1 %v3799_v26 }
 0x1bd   : > { %2819 = vmatpush3.bf16.msra.mxu0 %v3233_v5 }
 0x1be   : > { %2820 = vmatprep.subr.bf16.mxu0 %v3235_v14 }
 0x1c0   : > { %3001 = vmatmul.mubr.bf16.gmra.mxu0 %v3843_v62 }
 0x1c1   : > { %2821 = vmatpush3.bf16.msra.mxu0 %v3236_v15  ;;  %3004 = vmatprep.mubr.bf16.mxu0 %v3837_v56 }
 0x1c2   : > { %1672 = vmatmul.mubr.bf16.gmra.mxu1 %v3901_v48  ;;  %2822 = vmatprep.subr.bf16.mxu0 %v3238_v16 }
 0x1c3   : > { %1679 = vmatprep.mubr.bf16.mxu1 %v3845_v63 }
 0x1c5   : > { %2823 = vmatpush3.bf16.msra.mxu0 %v3239_v17 }
 0x1c6   : > { %2824 = vmatprep.subr.bf16.mxu0 %v3241_v18 }
 0x1c8   : > { %3005 = vmatmul.mubr.bf16.gmra.mxu0 %v3873_v21 }
 0x1c9   : > { %2825 = vmatpush3.bf16.msra.mxu0 %v3242_v19  ;;  %2010 = vmatprep.mubr.bf16.mxu0 %v3746_v31  ;;  %v3247_v31 = vld [vmem:[#allocation2 + $0x48] sm:$0xff]  }
 0x1ca   : > { %1680 = vmatmul.mubr.bf16.gmra.mxu1 %v3911_v50  ;;  %2826 = vmatprep.subr.bf16.mxu0 %v3244_v43  ;;  %v933_v23 = vshll.u32 %v3247_v31, 16 }
 0x1cb   : > { %3024 = vmatprep.mubr.bf16.mxu1 %v3790_v13 }
 0x1cc   : > { %v977_v13 = vrot.slane %v933_v23, 1 }
 0x1cd   : > { %2827 = vmatpush3.bf16.msra.mxu0 %v3245_v20 }
 0x1d0   : > { %2011 = vmatmul.mubr.bf16.vlgmr.msra.gmra.mxu0 %v3803_v28 }
 0x1d1   : > { %2018 = vmatprep.mubr.bf16.mxu0 %v3783_v9  ;;  %v930_v9 = vshrl.u32 %v3247_v31, 16 }
 0x1d2   : > { %3025 = vmatmul.mubr.bf16.vlgmr.msra.gmra.mxu1 %v3814_v37 }
 0x1d3   : > { %3028 = vmatprep.mubr.bf16.mxu1 %v3807_v34  ;;  %v978_v28 = vor.u32 %v977_v13, %v930_v9  ;;  %v932_v34 = vrot.slane %v930_v9, 7 }
 0x1d8   : > { %2019 = vmatmul.mubr.bf16.gmra.mxu0 %v3833_v54 }
 0x1d9   : > { %2026 = vmatprep.mubr.bf16.mxu0 %v3764_v61  ;;  %v1001_v61 = vsel %vm3768_vm5, %v978_v28, 0 }
 0x1da   : > { %3029 = vmatmul.mubr.bf16.gmra.mxu1 %v3843_v62 }
 0x1db   : > { %3032 = vmatprep.mubr.bf16.mxu1 %v3837_v56 }
 0x1e0   : > { %2027 = vmatmul.mubr.bf16.gmra.mxu0 %v3869_v10 }
 0x1e1   : > { %2034 = vmatprep.mubr.bf16.mxu0 %v3809_v36  ;;  %v935_v36 = vor.u32 %v933_v23, %v932_v34 }
 0x1e2   : > { %3033 = vmatmul.mubr.bf16.gmra.mxu1 %v3873_v21 }
 0x1e3   : > { %3036 = vmatprep.mubr.bf16.mxu1 %v3877_v22 }
 0x1e8   : > { %2035 = vmatmul.mubr.bf16.gmra.mxu0 %v3888_v38 }
 0x1e9   : > { %2042 = vmatprep.mubr.bf16.mxu0 %v3799_v26  ;;  %v958_v26 = vsel %vm3760_vm4, 0, %v935_v36 }
 0x1ea   : > { %3037 = vmatmul.mubr.bf16.gmra.mxu1 %v1001_v61 }
 0x1f0   : > { %2043 = vmatmul.mubr.bf16.gmra.mxu0 %v3901_v48 }
 0x1f1   : > { %2050 = vmatprep.mubr.bf16.mxu0 %v3845_v63 }
 0x1f8   : > { %2051 = vmatmul.mubr.bf16.gmra.mxu0 %v3911_v50 }
 0x1f9   : > { %2058 = vmatprep.mubr.bf16.mxu0 %v3829_v53 }
 0x200   : > { %2059 = vmatmul.mubr.bf16.gmra.mxu0 %v3925_v1 }
 0x201   : > { %2066 = vmatprep.mubr.bf16.mxu0 %v3247_v31 }
 0x208   : > { %2067 = vmatmul.mubr.bf16.gmra.mxu0 %v958_v26 }
 0x230   : > { %v2668_v0 = vpop.f32.mrf.mxu0 }
 0x232   : > { %v2962_v37 = vpop.f32.mrf.mxu1  ;;  %v2669_v54 = vpop.f32.mrf.mxu0 }
 0x233   : > { %v2670_v56 = vadd.f32 %v2669_v54, %v2668_v0 }
 0x234   : > { %v1384_v62 = vpop.f32.mrf.mxu1  ;;  %v2671_v10 = vpop.f32.mrf.mxu0 }
 0x235   : > { %v3971_v63 = vadd.f32 %v2670_v56, %v1384_v62 }
 0x236   : > { %v2963_v21 = vpop.f32.mrf.mxu1  ;;  %v2672_v22 = vpop.f32.mrf.mxu0 }
 0x237   : > { %v2673_v53 = vadd.f32 %v2672_v22, %v2671_v10 }
 0x238   : > { %v1387_v24 = vpop.f32.mrf.mxu1  ;;  %v2674_v45 = vpop.f32.mrf.mxu0 }
 0x239   : > { %v3973_v25 = vadd.f32 %v2673_v53, %v1387_v24 }
 0x23a   : > { %v2966_v27 = vpop.f32.mrf.mxu1  ;;  %v2675_v29 = vpop.f32.mrf.mxu0 }
 0x23b   : > { %v2676_v55 = vadd.f32 %v2675_v29, %v2674_v45 }
 0x23c   : > { %v1400_v30 = vpop.f32.mrf.mxu1  ;;  %v2677_v32 = vpop.f32.mrf.mxu0 }
 0x23d   : > { %v3975_v33 = vadd.f32 %v2962_v37, %v2676_v55 }
 0x23e   : > { %v2967_v38 = vpop.f32.mrf.mxu1  ;;  %v2678_v41 = vpop.f32.mrf.mxu0 }
 0x23f   : > { %v2679_v44 = vadd.f32 %v2678_v41, %v2677_v32 }
 0x240   : > { %v1403_v42 = vpop.f32.mrf.mxu1  ;;  %v2680_v46 = vpop.f32.mrf.mxu0 }
 0x241   : > { %v3977_v47 = vadd.f32 %v2963_v21, %v2679_v44 }
 0x242   : > { %v2970_v48 = vpop.f32.mrf.mxu1  ;;  %v2681_v39 = vpop.f32.mrf.mxu0 }
 0x243   : > { %v2682_v49 = vadd.f32 %v2681_v39, %v2680_v46 }
 0x244   : > { %v1416_v35 = vpop.f32.mrf.mxu1  ;;  %v2683_v40 = vpop.f32.mrf.mxu0 }
 0x245   : > { %v3979_v50 = vadd.f32 %v2682_v49, %v1400_v30 }
 0x246   : > { %v2971_v51 = vpop.f32.mrf.mxu1  ;;  %v2684_v52 = vpop.f32.mrf.mxu0 }
 0x247   : > { %v2685_v4 = vadd.f32 %v2684_v52, %v2683_v40 }
 0x248   : > { %v1419_v57 = vpop.f32.mrf.mxu1  ;;  %v2686_v58 = vpop.f32.mrf.mxu0 }
 0x249   : > { %v3981_v60 = vadd.f32 %v2685_v4, %v1403_v42 }
 0x24a   : > { %v2974_v1 = vpop.f32.mrf.mxu1  ;;  %v2687_v2 = vpop.f32.mrf.mxu0 }
 0x24b   : > { %v2688_v6 = vadd.f32 %v2687_v2, %v2686_v58 }
 0x24c   : > { %v1432_v59 = vpop.f32.mrf.mxu1  ;;  %v2689_v3 = vpop.f32.mrf.mxu0 }
 0x24d   : > { %v3983_v7 = vadd.f32 %v2966_v27, %v2688_v6 }
 0x24e   : > { %v2975_v8 = vpop.f32.mrf.mxu1  ;;  %v2690_v11 = vpop.f32.mrf.mxu0 }
 0x24f   : > { %v2691_v12 = vadd.f32 %v2690_v11, %v2689_v3 }
 0x250   : > { %v1435_v5 = vpop.f32.mrf.mxu1  ;;  %v2692_v14 = vpop.f32.mrf.mxu0 }
 0x251   : > { %v3985_v15 = vadd.f32 %v2967_v38, %v2691_v12 }
 0x252   : > { %v3987_v16 = vpop.f32.mrf.mxu1  ;;  %v2693_v17 = vpop.f32.mrf.mxu0 }
 0x253   : > { %v2694_v18 = vadd.f32 %v2693_v17, %v2692_v14 }
 0x254   : > { %v3989_v19 = vpop.f32.mrf.mxu1  ;;  %v2695_v43 = vpop.f32.mrf.mxu0 }
 0x255   : > { %v3991_v20 = vadd.f32 %v2694_v18, %v1416_v35 }
 0x256   : > { %v3993_v31 = vpop.f32.mrf.mxu1  ;;  %v2696_v23 = vpop.f32.mrf.mxu0 }
 0x257   : > { %v2697_v13 = vadd.f32 %v2696_v23, %v2695_v43 }
 0x258   : > { %v3995_v9 = vpop.f32.mrf.mxu1  ;;  %v2698_v28 = vpop.f32.mrf.mxu0 }
 0x259   : > { %v3997_v61 = vadd.f32 %v2697_v13, %v1419_v57 }
 0x25a   : > { %v3999_v34 = vpop.f32.mrf.mxu1  ;;  %v2699_v36 = vpop.f32.mrf.mxu0 }
 0x25b   : > { %v2700_v26 = vadd.f32 %v2699_v36, %v2698_v28 }
 0x25c   : > { %v4001_v0 = vpop.f32.mrf.mxu1  ;;  %v2701_v37 = vpop.f32.mrf.mxu0 }
 0x25d   : > { %v4003_v54 = vadd.f32 %v2970_v48, %v2700_v26 }
 0x25e   : > { %v4005_v56 = vpop.f32.mrf.mxu1  ;;  %v2702_v62 = vpop.f32.mrf.mxu0 }
 0x25f   : > { %v2703_v10 = vadd.f32 %v2702_v62, %v2701_v37 }
 0x260   : > { %v4007_v21 = vpop.f32.mrf.mxu1  ;;  %v2704_v22 = vpop.f32.mrf.mxu0 }
 0x261   : > { %v4009_v53 = vadd.f32 %v2971_v51, %v2703_v10 }
 0x262   : > { %v4011_v24 = vpop.f32.mrf.mxu1  ;;  %v2705_v45 = vpop.f32.mrf.mxu0 }
 0x263   : > { %4286 = vst [vmem:[#allocation24_spill] sm:$0xff] %v4009_v53  ;;  %v2706_v27 = vadd.f32 %v2705_v45, %v2704_v22 }
 0x264   : > { %v4013_v29 = vpop.f32.mrf.mxu1  ;;  %v2707_v55 = vpop.f32.mrf.mxu0 }
 0x265   : > { %v4015_v30 = vadd.f32 %v2706_v27, %v1432_v59 }
 0x266   : > { %v4017_v32 = vpop.f32.mrf.mxu1  ;;  %v2708_v38 = vpop.f32.mrf.mxu0 }
 0x267   : > { %4287 = vst [vmem:[#allocation25_spill] sm:$0xff] %v4015_v30  ;;  %v2709_v41 = vadd.f32 %v2708_v38, %v2707_v55 }
 0x268   : > { %v4019_v44 = vpop.f32.mrf.mxu1  ;;  %v2710_v42 = vpop.f32.mrf.mxu0 }
 0x269   : > { %v4021_v46 = vadd.f32 %v2709_v41, %v1435_v5 }
 0x26a   : > { %v4023_v48 = vpop.f32.mrf.mxu1  ;;  %v2711_v39 = vpop.f32.mrf.mxu0 }
 0x26b   : > { %4288 = vst [vmem:[#allocation26_spill] sm:$0xff] %v4021_v46  ;;  %v2712_v49 = vadd.f32 %v2711_v39, %v2710_v42  ;;  %v2750_v46 = vadd.f32 %v3989_v19, %v3987_v16 }
 0x26c   : > { %v4025_v35 = vpop.f32.mrf.mxu1  ;;  %v2713_v40 = vpop.f32.mrf.mxu0 }
 0x26d   : > { %v1441_v51 = vadd.f32 %v2974_v1, %v2712_v49 }
 0x26e   : > { %v4027_v52 = vpop.f32.mrf.mxu1  ;;  %v2714_v4 = vpop.f32.mrf.mxu0 }
 0x26f   : > { %v2715_v57 = vadd.f32 %v2714_v4, %v2713_v40 }
 0x270   : > { %v4029_v58 = vpop.f32.mrf.mxu1  ;;  %v4031_v2 = vpop.f32.mrf.mxu0 }
 0x271   : > { %v1444_v6 = vadd.f32 %v2975_v8, %v2715_v57 }
 0x272   : > { %v4033_v59 = vpop.f32.mrf.mxu1  ;;  %v1722_v3 = vpop.f32.mrf.mxu0 }
 0x274   : > { %v4035_v11 = vpop.f32.mrf.mxu1  ;;  %v4037_v12 = vpop.f32.mrf.mxu0 }
 0x276   : > { %v4039_v5 = vpop.f32.mrf.mxu1  ;;  %v1725_v14 = vpop.f32.mrf.mxu0 }
 0x278   : > { %v4041_v1 = vpop.f32.mrf.mxu1  ;;  %v4043_v17 = vpop.f32.mrf.mxu0 }
 0x27a   : > { %v4045_v18 = vpop.f32.mrf.mxu1  ;;  %v4047_v43 = vpop.f32.mrf.mxu0 }
 0x27c   : > { %v4049_v23 = vpop.f32.mrf.mxu1  ;;  %v4051_v8 = vpop.f32.mrf.mxu0 }
 0x27e   : > { %v4053_v13 = vpop.f32.mrf.mxu1  ;;  %v4055_v28 = vpop.f32.mrf.mxu0 }
 0x280   : > { %v4057_v36 = vpop.f32.mrf.mxu1  ;;  %v4059_v26 = vpop.f32.mrf.mxu0 }
 0x281   : > { %4289 = vst [vmem:[#allocation27_spill] sm:$0xff] %v4057_v36  ;;  %4290 = vst [vmem:[#allocation28_spill] sm:$0xff] %v4059_v26 }
 0x282   : > { %v4061_v37 = vpop.f32.mrf.mxu1  ;;  %v4063_v62 = vpop.f32.mrf.mxu0 }
 0x283   : > { %4291 = vst [vmem:[#allocation29_spill] sm:$0xff] %v4061_v37 }
 0x284   : > { %v4065_v10 = vpop.f32.mrf.mxu1  ;;  %v4067_v22 = vpop.f32.mrf.mxu0 }
 0x285   : > { %4292 = vst [vmem:[#allocation30_spill] sm:$0xff] %v4065_v10  ;;  %4293 = vst [vmem:[#allocation31_spill] sm:$0xff] %v4067_v22 }
 0x286   : > { %v4069_v45 = vpop.f32.mrf.mxu1  ;;  %v4071_v27 = vpop.f32.mrf.mxu0 }
 0x287   : > { %4294 = vst [vmem:[#allocation32_spill] sm:$0xff] %v4069_v45  ;;  %4295 = vst [vmem:[#allocation33_spill] sm:$0xff] %v4071_v27 }
 0x288   : > { %v4073_v55 = vpop.f32.mrf.mxu1  ;;  %v3006_v38 = vpop.f32.mrf.mxu0 }
 0x289   : > { %4296 = vst [vmem:[#allocation34_spill] sm:$0xff] %v4073_v55 }
 0x28a   : > { %v2790_v41 = vpop.f32.mrf.mxu1  ;;  %v4075_v42 = vpop.f32.mrf.mxu0 }
 0x28b   : > { %4297 = vst [vmem:[#allocation35_spill] sm:$0xff] %v4075_v42  ;;  %v2753_v42 = vadd.f32 %v3995_v9, %v3993_v31 }
 0x28c   : > { %v2791_v39 = vpop.f32.mrf.mxu1  ;;  %v3007_v49 = vpop.f32.mrf.mxu0 }
 0x28d   : > { %v2792_v40 = vadd.f32 %v2791_v39, %v2790_v41  ;;  %v1626_v41 = vadd.f32 %v2750_v46, %v3971_v63  ;;  %v1629_v63 = vadd.f32 %v2753_v42, %v3973_v25 }
 0x28e   : > { %v2793_v4 = vpop.f32.mrf.mxu1  ;;  %v4077_v57 = vpop.f32.mrf.mxu0 }
 0x28f   : > { %4298 = vst [vmem:[#allocation36_spill] sm:$0xff] %v4077_v57  ;;  %v1682_v30 = vadd.f32 %v2792_v40, %v1441_v51  ;;  %v1723_v36 = vadd.f32 %v1722_v3, %v1626_v41  ;;  %v4093_v51 = vld [vmem:[%s4299_s20] ss:$0 sm:$0xff]  ;;  %v1726_v3 = vadd.f32 %v1725_v14, %v1629_v63 }
 0x290   : > { %v2794_v22 = vpop.f32.mrf.mxu1  ;;  %v2828_v45 = vpop.f32.mrf.mxu0 }
 0x291   : > { %v4081_v10 = vadd.f32 %v3006_v38, %v1682_v30  ;;  %v2795_v37 = vadd.f32 %v2794_v22, %v2793_v4  ;;  %v2756_v30 = vadd.f32 %v4001_v0, %v3999_v34 }
 0x292   : > { %v3026_v55 = vpop.f32.mrf.mxu1  ;;  %v2829_v53 = vpop.f32.mrf.mxu0 }
 0x293   : > { %v1685_v39 = vadd.f32 %v2795_v37, %v1444_v6  ;;  %v2830_v26 = vadd.f32 %v2829_v53, %v2828_v45  ;;  %v1634_v34 = vadd.f32 %v2756_v30, %v3975_v33  ;;  %v2759_v45 = vadd.f32 %v4007_v21, %v4005_v56 }
 0x294   : > { %v2109_v57 = vpop.f32.mrf.mxu1  ;;  %v2831_v27 = vpop.f32.mrf.mxu0  ;;  %v2762_v33 = vadd.f32 %v4013_v29, %v4011_v24  ;;  %v2765_v24 = vadd.f32 %v4019_v44, %v4017_v32 }
 0x295   : > { %v4086_v16 = vadd.f32 %v3007_v49, %v1685_v39  ;;  %v2110_v19 = vadd.f32 %v2830_v26, %v2109_v57  ;;  %v1637_v56 = vadd.f32 %v2759_v45, %v3977_v47 }
 0x296   : > { %v3027_v22 = vpop.f32.mrf.mxu1  ;;  %v2832_v31 = vpop.f32.mrf.mxu0 }
 0x297   : > { %v2172_v9 = vadd.f32 %v2110_v19, %v1723_v36  ;;  %v2833_v53 = vadd.f32 %v2832_v31, %v2831_v27  ;;  %v1731_v36 = vadd.f32 %v4031_v2, %v1634_v34  ;;  %v1734_v19 = vadd.f32 %v4037_v12, %v1637_v56 }
 0x298   : > { %v2112_v46 = vpop.f32.mrf.mxu1  ;;  %v2834_v6 = vpop.f32.mrf.mxu0 }
 0x299   : > { %v2195_v26 = vadd.f32 %v4093_v51, %v2172_v9  ;;  %v2113_v37 = vadd.f32 %v2833_v53, %v2112_v46 }
 0x29a   : > { %v2835_v0 = vpop.f32.mrf.mxu0  ;;  %v3030_v4 = vpop.f32.mrf.mxu1 }
 0x29b   : > { %v2211_v38 = vmax.f32 %v2195_v26, 0.0  ;;  %v2173_v49 = vadd.f32 %v2113_v37, %v1726_v3  ;;  %v2836_v40 = vadd.f32 %v2835_v0, %v2834_v6  ;;  %v1645_v26 = vadd.f32 %v2765_v24, %v3981_v60 }
 0x29c   : > { %v2837_v25 = vpop.f32.mrf.mxu0  ;;  %v2125_v39 = vpop.f32.mrf.mxu1 }
 0x29d   : > { %2227 = vst [vmem:[%s4102_s10] sm:$0xff] %v2211_v38  ;;  %v2196_v14 = vadd.f32 %v4093_v51, %v2173_v49  ;;  %v2118_v27 = vadd.f32 %v3026_v55, %v2836_v40  ;;  %v1642_v55 = vadd.f32 %v2762_v33, %v3979_v50  ;;  %v1742_v45 = vadd.f32 %v4055_v28, %v1645_v26 }
 0x29e   : > { %v2838_v42 = vpop.f32.mrf.mxu0  ;;  %v3031_v53 = vpop.f32.mrf.mxu1 }
 0x29f   : > { %v2212_v21 = vmax.f32 %v2196_v14, 0.0  ;;  %v2174_v57 = vadd.f32 %v2118_v27, %v1731_v36  ;;  %v2839_v41 = vadd.f32 %v2838_v42, %v2837_v25  ;;  %v1739_v6 = vadd.f32 %v4047_v43, %v1642_v55 }
 0x2a0   : > { %v2840_v2 = vpop.f32.mrf.mxu0  ;;  %v2128_v34 = vpop.f32.mrf.mxu1  ;;  %v2774_v42 = vadd.f32 %v4035_v11, %v4033_v59  ;;  %v2777_v59 = vadd.f32 %v4041_v1, %v4039_v5 }
 0x2a1   : > { %2228 = vst [vmem:[%s4102_s10 + $0x8] sm:$0xff] %v2212_v21  ;;  %v2197_v30 = vadd.f32 %v4093_v51, %v2174_v57  ;;  %v2121_v31 = vadd.f32 %v3027_v22, %v2839_v41  ;;  %v2768_v22 = vadd.f32 %v4025_v35, %v4023_v48  ;;  %v2771_v48 = vadd.f32 %v4029_v58, %v4027_v52 }
 0x2a2   : > { %v2841_v63 = vpop.f32.mrf.mxu0  ;;  %v3034_v36 = vpop.f32.mrf.mxu1 }
 0x2a3   : > { %v2213_v29 = vmax.f32 %v2197_v30, 0.0  ;;  %v2175_v47 = vadd.f32 %v2121_v31, %v1734_v19  ;;  %v2842_v9 = vadd.f32 %v2841_v63, %v2840_v2  ;;  %v1650_v49 = vadd.f32 %v2768_v22, %v3983_v7 }
 0x2a4   : > { %v2843_v46 = vpop.f32.mrf.mxu0  ;;  %v1653_v56 = vadd.f32 %v2771_v48, %v3985_v15  ;;  %v2141_v57 = vpop.f32.mrf.mxu1  ;;  %v2780_v31 = vadd.f32 %v4049_v23, %v4045_v18  ;;  %v4300_v23 = vld [vmem:[#allocation27_spill] sm:$0xff] }
 0x2a5   : > { %2229 = vst [vmem:[%s4102_s10 + $0x10] sm:$0xff] %v2213_v29  ;;  %v2198_v12 = vadd.f32 %v4093_v51, %v2175_v47  ;;  %v2126_v3 = vadd.f32 %v2842_v9, %v2125_v39  ;;  %v1747_v27 = vadd.f32 %v4043_v17, %v1650_v49  ;;  %v1661_v47 = vadd.f32 %v2777_v59, %v3997_v61  ;;  %v4305_v49 = vld [vmem:[#allocation30_spill] sm:$0xff] }
 0x2a6   : > { %v2844_v50 = vpop.f32.mrf.mxu0  ;;  %v1750_v39 = vadd.f32 %v4051_v8, %v1653_v56  ;;  %v3035_v55 = vpop.f32.mrf.mxu1  ;;  %v4307_v56 = vld [vmem:[#allocation25_spill] sm:$0xff] }
 0x2a7   : > { %v2214_v37 = vmax.f32 %v2198_v12, 0.0  ;;  %v2176_v32 = vadd.f32 %v2126_v3, %v1739_v6  ;;  %v2845_v44 = vadd.f32 %v2844_v50, %v2843_v46  ;;  %v2783_v6 = vadd.f32 %v4300_v23, %v4053_v13  ;;  %v4301_v12 = vld [vmem:[#allocation33_spill] sm:$0xff] }
 0x2a8   : > { %v2846_v0 = vpop.f32.mrf.mxu0  ;;  %v2144_v46 = vpop.f32.mrf.mxu1 }
 0x2a9   : > { %2230 = vst [vmem:[%s4102_s10 + $0x18] sm:$0xff] %v2214_v37  ;;  %v2199_v43 = vadd.f32 %v4093_v51, %v2176_v32  ;;  %v2129_v38 = vadd.f32 %v2845_v44, %v2128_v34 }
 0x2aa   : > { %v2847_v40 = vpop.f32.mrf.mxu0  ;;  %v3038_v32 = vpop.f32.mrf.mxu1 }
 0x2ab   : > { %v2215_v35 = vmax.f32 %v2199_v43, 0.0  ;;  %v2177_v60 = vadd.f32 %v2129_v38, %v1742_v45  ;;  %v2848_v25 = vadd.f32 %v2847_v40, %v2846_v0  ;;  %v4303_v0 = vld [vmem:[#allocation24_spill] sm:$0xff]  ;;  %v4304_v38 = vld [vmem:[#allocation29_spill] sm:$0xff] }
 0x2ac   : > { %v2849_v14 = vpop.f32.mrf.mxu0  ;;  %v1669_v45 = vadd.f32 %v2783_v6, %v4303_v0  ;;  %v2786_v40 = vadd.f32 %v4305_v49, %v4304_v38 }
 0x2ad   : > { %2231 = vst [vmem:[%s4102_s10 + $0x20] sm:$0xff] %v2215_v35  ;;  %v2200_v28 = vadd.f32 %v4093_v51, %v2177_v60  ;;  %v2134_v33 = vadd.f32 %v3030_v4, %v2848_v25  ;;  %v1658_v4 = vadd.f32 %v2774_v42, %v3991_v20 }
 0x2ae   : > { %v2850_v7 = vpop.f32.mrf.mxu0 }
 0x2af   : > { %v2216_v21 = vmax.f32 %v2200_v28, 0.0  ;;  %v2178_v52 = vadd.f32 %v2134_v33, %v1747_v27  ;;  %v2851_v58 = vadd.f32 %v2850_v7, %v2849_v14  ;;  %v1755_v8 = vadd.f32 %v4063_v62, %v1658_v4  ;;  %v2157_v14 = vpop.f32.mrf.mxu1  ;;  %v4306_v28 = vld [vmem:[#allocation31_spill] sm:$0xff] }
 0x2b0   : > { %v2852_v41 = vpop.f32.mrf.mxu0  ;;  %v1758_v62 = vadd.f32 %v4301_v12, %v1661_v47  ;;  %v1766_v33 = vadd.f32 %v4306_v28, %v1669_v45  ;;  %v4313_v47 = vld [vmem:[#allocation36_spill] sm:$0xff] }
 0x2b1   : > { %2232 = vst [vmem:[%s4102_s10 + $0x28] sm:$0xff] %v2216_v21  ;;  %v2201_v17 = vadd.f32 %v4093_v51, %v2178_v52  ;;  %v2137_v2 = vadd.f32 %v3031_v53, %v2851_v58  ;;  %v1666_v53 = vadd.f32 %v2780_v31, %v4003_v54  ;;  %v4302_v54 = vld [vmem:[#allocation28_spill] sm:$0xff]  ;;  %v1674_v21 = vadd.f32 %v2786_v40, %v4307_v56  ;;  %v4309_v58 = vld [vmem:[#allocation34_spill] sm:$0xff] }
 0x2b2   : > { %v2853_v19 = vpop.f32.mrf.mxu0  ;;  %v4311_v31 = vld [vmem:[#allocation26_spill] sm:$0xff] }
 0x2b3   : > { %v2217_v11 = vmax.f32 %v2201_v17, 0.0  ;;  %v2179_v15 = vadd.f32 %v2137_v2, %v1750_v39  ;;  %v2854_v30 = vadd.f32 %v2853_v19, %v2852_v41  ;;  %v1763_v34 = vadd.f32 %v4302_v54, %v1666_v53  ;;  %v3039_v2 = vpop.f32.mrf.mxu1  ;;  %v4310_v19 = vld [vmem:[#allocation35_spill] sm:$0xff] }
 0x2b4   : > { %v2855_v63 = vpop.f32.mrf.mxu0  ;;  %v1771_v59 = vadd.f32 %v4310_v19, %v1674_v21 }
 0x2b5   : > { %2233 = vst [vmem:[%s4102_s10 + $0x30] sm:$0xff] %v2217_v11  ;;  %v2202_v24 = vadd.f32 %v4093_v51, %v2179_v15  ;;  %v2142_v29 = vadd.f32 %v2854_v30, %v2141_v57 }
 0x2b6   : > { %v2856_v20 = vpop.f32.mrf.mxu0 }
 0x2b7   : > { %v2218_v9 = vmax.f32 %v2202_v24, 0.0  ;;  %v2180_v5 = vadd.f32 %v2142_v29, %v1755_v8  ;;  %v2857_v1 = vadd.f32 %v2856_v20, %v2855_v63  ;;  %v2160_v29 = vpop.f32.mrf.mxu1 }
 0x2b8   : > { %v2858_v18 = vpop.f32.mrf.mxu0 }
 0x2b9   : > { %2234 = vst [vmem:[%s4102_s10 + $0x38] sm:$0xff] %v2218_v9  ;;  %v2203_v3 = vadd.f32 %v4093_v51, %v2180_v5  ;;  %v2145_v22 = vadd.f32 %v2857_v1, %v2144_v46 }
 0x2ba   : > { %v2859_v50 = vpop.f32.mrf.mxu0 }
 0x2bb   : > { %v2219_v26 = vmax.f32 %v2203_v3, 0.0  ;;  %v2181_v61 = vadd.f32 %v2145_v22, %v1758_v62  ;;  %v2860_v37 = vadd.f32 %v2859_v50, %v2858_v18 }
 0x2bc   : > { %v2861_v44 = vpop.f32.mrf.mxu0 }
 0x2bd   : > { %2235 = vst [vmem:[%s4102_s10 + $0x40] sm:$0xff] %v2219_v26  ;;  %v2204_v13 = vadd.f32 %v4093_v51, %v2181_v61  ;;  %v2150_v43 = vadd.f32 %v3034_v36, %v2860_v37  ;;  %v4308_v36 = vld [vmem:[#allocation32_spill] sm:$0xff] }
 0x2be   : > { %v2862_v48 = vpop.f32.mrf.mxu0  ;;  %v2789_v57 = vadd.f32 %v4309_v58, %v4308_v36 }
 0x2bf   : > { %v2220_v35 = vmax.f32 %v2204_v13, 0.0  ;;  %v2182_v60 = vadd.f32 %v2150_v43, %v1763_v34  ;;  %v2863_v25 = vadd.f32 %v2862_v48, %v2861_v44 }
 0x2c0   : > { %v2864_v27 = vpop.f32.mrf.mxu0 }
 0x2c1   : > { %2236 = vst [vmem:[%s4102_s10 + $0x48] sm:$0xff] %v2220_v35  ;;  %v2205_v42 = vadd.f32 %v4093_v51, %v2182_v60  ;;  %v2153_v7 = vadd.f32 %v3035_v55, %v2863_v25  ;;  %v1677_v55 = vadd.f32 %v2789_v57, %v4311_v31 }
 0x2c2   : > { %v2865_v52 = vpop.f32.mrf.mxu0 }
 0x2c3   : > { %v2221_v41 = vmax.f32 %v2205_v42, 0.0  ;;  %v2183_v39 = vadd.f32 %v2153_v7, %v1766_v33  ;;  %v2866_v17 = vadd.f32 %v2865_v52, %v2864_v27  ;;  %v1774_v9 = vadd.f32 %v4313_v47, %v1677_v55 }
 0x2c4   : > { %v2867_v4 = vpop.f32.mrf.mxu0 }
 0x2c5   : > { %2237 = vst [vmem:[%s4102_s10 + $0x50] sm:$0xff] %v2221_v41  ;;  %v2206_v11 = vadd.f32 %v4093_v51, %v2183_v39  ;;  %v2158_v15 = vadd.f32 %v2866_v17, %v2157_v14 }
 0x2c6   : > { %v2868_v30 = vpop.f32.mrf.mxu0 }
 0x2c7   : > { %v2222_v63 = vmax.f32 %v2206_v11, 0.0  ;;  %v2184_v8 = vadd.f32 %v2158_v15, %v1771_v59  ;;  %v2869_v24 = vadd.f32 %v2868_v30, %v2867_v4 }
 0x2c8   : > { %v2870_v20 = vpop.f32.mrf.mxu0 }
 0x2c9   : > { %2238 = vst [vmem:[%s4102_s10 + $0x58] sm:$0xff] %v2222_v63  ;;  %v2207_v5 = vadd.f32 %v4093_v51, %v2184_v8  ;;  %v2161_v1 = vadd.f32 %v2869_v24, %v2160_v29 }
 0x2ca   : > { %v2871_v53 = vpop.f32.mrf.mxu0 }
 0x2cb   : > { %v2223_v46 = vmax.f32 %v2207_v5, 0.0  ;;  %v2185_v18 = vadd.f32 %v2161_v1, %v1774_v9  ;;  %v2872_v23 = vadd.f32 %v2871_v53, %v2870_v20 }
 0x2cc   : > { %v2873_v6 = vpop.f32.mrf.mxu0 }
 0x2cd   : > { %2239 = vst [vmem:[%s4102_s10 + $0x60] sm:$0xff] %v2223_v46  ;;  %v2208_v12 = vadd.f32 %v4093_v51, %v2185_v18  ;;  %v2166_v62 = vadd.f32 %v3038_v32, %v2872_v23 }
 0x2ce   : > { %v2874_v3 = vpop.f32.mrf.mxu0 }
 0x2cf   : > { %v2224_v22 = vmax.f32 %v2208_v12, 0.0  ;;  %v2186_v50 = vadd.f32 %v2166_v62, %v4081_v10  ;;  %v2875_v26 = vadd.f32 %v2874_v3, %v2873_v6 }
 0x2d1   : > { %2240 = vst [vmem:[%s4102_s10 + $0x68] sm:$0xff] %v2224_v22  ;;  %v2209_v61 = vadd.f32 %v4093_v51, %v2186_v50  ;;  %v2169_v37 = vadd.f32 %v3039_v2, %v2875_v26 }
 0x2d3   : > { %v2225_v44 = vmax.f32 %v2209_v61, 0.0  ;;  %v2187_v54 = vadd.f32 %v2169_v37, %v4086_v16 }
 0x2d5   : > { %2241 = vst [vmem:[%s4102_s10 + $0x70] sm:$0xff] %v2225_v44  ;;  %v2210_v32 = vadd.f32 %v4093_v51, %v2187_v54 }
 0x2d7   : > { %v2226_v10 = vmax.f32 %v2210_v32, 0.0 }
 0x2d9   : > { %2242 = vst [vmem:[%s4102_s10 + $0x78] sm:$0xff] %v2226_v10 }
 0x2da   : > { %3369 = shalt.err (!%p3366_p3)
}
 0x2db   : > { %s3370_s13 = scalar_lea.hbm %s4184_s0, 2048  ;;  %s3374_s19 = scalar_lea.hbm %s4315_s16, 8192 }
 0x2dc   : > { %p3371_p10 = scmp.ne.s32.totalorder %s4184_s0, %s3370_s13  ;;  %p3375_p1 = scmp.lt.s32.totalorder %s4184_s0, %s4315_s16 }
 0x2dd   : > { %p3376_p4 = scmp.lt.s32.totalorder %s3374_s19, %s3370_s13 }
 0x2de   : > { %p3372_p5 = pnand %p3371_p10, %p3623_p0 }
 0x2df   : > { %p3377_p8 = por %p3376_p4, %p3375_p1 }
 0x2e0   : > { %p3373_p2 = pneg %p3372_p5 }
 0x2e2   : > { %p3378_p7 = pnand %p3377_p8, %p3373_p2 }
 0x2e4   : > { %3381 = shalt.err (!%p3378_p7)
}
 0x2e5   : > { %s3473_s10 = smov 128   ;;  %s3474_s2 = smov 8  }
 0x2e6   : > { %3052 = dma.vmem_to_hbm [thread:$0]  (%p3623_p0), %s4186_s8, 2048, %s4184_s0, %s2244_s5, %s3473_s10, %s3473_s10, %s3474_s2  }
 0x2e7 PF: > { %s4316_s4 = sld [smem:[#allocation17_spill]]  ;;  %p3077_p9 = scmp.ge.s32.totalorder %s3464_s28, 2 }
 0x2e9   : > { %p3069_p11 = pnand %p3077_p9, %p3565_p6 }
 0x2eb   : > { %p3070_p12 = pneg %p3069_p11 }
 0x2ed   : > { %s2275_s21 = sand.u32 1, %s4316_s4  }
 0x2ee   : > { %s2276_s11 = scalar_lea.sflag [#allocation5], %s2275_s21 }
 0x2ef   : > { %3431 = dma.done.wait (%p3070_p12), %s2276_s11, 2048  }
 0x2f0   : > { %3433 = vsyncadd (%p3070_p12), %s2276_s11, 4294965248  ;;  %s26_s28 = sadd.s32 1, %s3464_s28   ;;  %s4318_s25 = sld [smem:[#allocation23_spill]] }
 0x2f1   : > { %p23_p13 = scmp.ge.s32.totalorder %s26_s28, 6   ;;  %s4319_s15 = sld [smem:[#allocation20_spill]] }
 0x2f2   : > { %s4320_s8 = sld [smem:[#allocation22_spill]]  ;;  %s4321_s21 = smov %s3440_s22 }
 0x2f3   : > { %s4322_s22 = smov %s3444_s23  ;;  %s4324_s24 = smov %s3456_s26 }
 0x2f4   :  { %25 = sbr.rel (!%p23_p13) target bundleno = 16 (0x10), region = 114 }
 0x2f6   : > { %s4323_s23 = smov %s4318_s25  ;;  %s4325_s25 = smov %s3460_s27 }
 0x2f7   : > { %s4326_s26 = smov %s4319_s15 }
 0x2f8   : > { %s4327_s27 = smov %s4320_s8 }
 0x2f9   :  { %2281 = vsyncpa [#allocation4], 1 }
 0x2fa   :  { %2283 = vsyncpa [#allocation4 + $0x1], 1 }
 0x2fb   :  { %2284 = vsyncpa [#allocation7], 1 }
 0x2fc   :  { %2286 = vsyncpa [#allocation7 + $0x1], 1 }
 0x2fd   :  { %2287 = vsyncpa [#allocation10], 1 }
 0x2fe   :  { %2288 = vsyncpa [#allocation5], 1 }
 0x2ff   :  { %2290 = vsyncpa [#allocation5 + $0x1], 1 }

</bundles_post_ra>
